<compile_context>
chip_gen: v6e
topology: v6e:2x2x1
jax: 0.10.0
libtpu: 0.0.40
codegen_flags: <defaults>
</compile_context>

<pallas_src>
import functools
import numpy as np
import jax
import jax.numpy as jnp
from jax.experimental import pallas as pl
from jax.experimental.pallas import tpu as pltpu


# --------------------------------- kernel -----------------------------------

def upsample_kernel(x_ref, m_ref, o_ref):
    # x_ref: (TR, H*W)   activation row-tile (rows = flattened B*C), native dtype
    # m_ref: (H*W, Ho*Wo) bilinear interpolation matrix (grid-resident)
    x = x_ref[...]
    m = m_ref[...]
    if m.dtype != x.dtype:            # trace-time branch: only upcasts bf16->f32
        m = m.astype(x.dtype)         # weights are exact in bf16, so lossless
    o_ref[...] = jnp.dot(x, m, preferred_element_type=jnp.float32).astype(o_ref.dtype)


# ------------------------------ wrapper helpers ------------------------------

def _interp_matrix_np(in_size, out_size):
    """1-D linear-interp matrix matching PyTorch bilinear, align_corners=False."""
    scale = np.float32(in_size / out_size)
    dst = np.arange(out_size, dtype=np.float32)
    src = np.maximum((dst + 0.5) * scale - 0.5, 0.0)          # clamp negatives (PyTorch)
    i0 = np.minimum(np.floor(src).astype(np.int64), in_size - 1)
    i1 = np.minimum(i0 + 1, in_size - 1)
    w1 = (src - i0).astype(np.float32)
    w0 = (1.0 - w1).astype(np.float32)
    m = np.zeros((out_size, in_size), np.float32)
    idx = np.arange(out_size)
    np.add.at(m, (idx, i0), w0)
    np.add.at(m, (idx, i1), w1)
    return m                                                  # (out_size, in_size)


@functools.lru_cache(maxsize=32)
def _kron_interp_matrix(H, W, Ho, Wo):
    """Cached (H*W, Ho*Wo) interpolation matrix; bf16 when exactly representable."""
    Ay = _interp_matrix_np(H, Ho)                             # (Ho, H)
    Ax = _interp_matrix_np(W, Wo)                             # (Wo, W)
    # out_flat = x_flat @ kron(Ay, Ax)^T  (row-major H*W flattening)
    M = np.ascontiguousarray(np.kron(Ay, Ax).T, dtype=np.float32)
    # bf16 is lossless iff the low 16 mantissa bits are zero for every weight
    # (true for the module's default 2x bilinear weights: 0.5625/0.1875/0.0625/...).
    exact_in_bf16 = bool((M.view(np.uint32) & np.uint32(0xFFFF) == 0).all())
    return jnp.asarray(M, dtype=jnp.bfloat16 if exact_in_bf16 else jnp.float32)


def _pick_row_tile(n, x_dtype):
    """Pick TR first (largest sublane-aligned tile <= N, capped at 256)."""
    tr = 8
    for cand in (256, 128, 64, 32, 16, 8):
        if cand <= n:
            tr = cand
            break
    # bf16 packs 16 rows per vreg; TR multiples of 16 avoid half-masked packed rows.
    if x_dtype == jnp.dtype(jnp.bfloat16) and tr >= 16:
        tr = (tr // 16) * 16
    # v7x has 2 TensorCores: make sure the "parallel" row axis has >= 2 grid steps.
    try:
        if 'v7' in jax.devices()[0].device_kind.lower() and pl.cdiv(n, tr) < 2 and tr >= 16:
            tr //= 2
    except Exception:
        pass
    return max(tr, 8)


def upsample_pallas(x, target_shape=None, up_type='full', out_dtype=None):
    B, C, H, W = x.shape
    if target_shape is None:
        Ho = H * 2
        Wo = W * 2 if up_type == 'full' else W
    else:
        Ho, Wo = int(target_shape[0]), int(target_shape[1])

    HW, HoWo = H * W, Ho * Wo
    N = B * C
    out_dtype = x.dtype if out_dtype is None else out_dtype   # bf16 output is opt-in

    # TODO(synk): kron matrix is O((H*W)*(Ho*Wo)); once H*W approaches ~2K (v7x,
    # 64 MiB VMEM) / ~4K (v5e/v6e) switch to a separable two-GEMM pass
    # (Ay @ X @ Ax^T) with spatial row-tiling instead of the fused kron GEMM.
    M = _kron_interp_matrix(H, W, Ho, Wo)                     # cached host-built constant

    xf = x.reshape(N, HW)                                     # NCHW-flat: free reshape, no pad
    TR = _pick_row_tile(N, x.dtype)
    grid = (pl.cdiv(N, TR),)                                  # ragged last block handled by Pallas

    # Explicit VMEM budget: x/out tiles double-buffered + M (counted twice to
    # cover the double-buffered fallback), with headroom; safe on every generation.
    need = (2 * TR * HW * x.dtype.itemsize
            + 2 * TR * HoWo * np.dtype(out_dtype).itemsize
            + 2 * HW * HoWo * M.dtype.itemsize)
    vmem_limit = int(min(max(need * 3 // 2, 16 * 1024 * 1024), 100 * 1024 * 1024))

    def build(single_buffer_m):
        m_spec_kwargs = dict(pipeline_mode=pl.Buffered(1)) if single_buffer_m else {}
        return pl.pallas_call(
            upsample_kernel,
            out_shape=jax.ShapeDtypeStruct((N, HoWo), out_dtype),
            grid=grid,
            in_specs=[
                pl.BlockSpec((TR, HW), lambda i: (i, 0)),            # activation row-tile
                pl.BlockSpec((HW, HoWo), lambda i: (0, 0), **m_spec_kwargs),  # interp matrix
            ],
            out_specs=pl.BlockSpec((TR, HoWo), lambda i: (i, 0)),    # lane-dense output
            compiler_params=pltpu.CompilerParams(
                dimension_semantics=("parallel",),
                vmem_limit_bytes=vmem_limit),
        )

    try:
        # Preferred path: M single-buffered (its block index is constant over the grid).
        out = jax.block_until_ready(build(True)(xf, M))
    except Exception:
        # Fallback for Pallas versions without pipeline_mode support.
        out = build(False)(xf, M)

    return out.reshape(B, C, Ho, Wo)                          # NCHW-native, no transpose


# ----------------------------- pure-JAX reference ----------------------------

def upsample_reference(x, target_shape=None, up_type='full'):
    B, C, H, W = x.shape
    if target_shape is None:
        Ho = H * 2
        Wo = W * 2 if up_type == 'full' else W
    else:
        Ho, Wo = int(target_shape[0]), int(target_shape[1])

    def src_idx(out_size, in_size):
        scale = in_size / out_size
        d = jnp.arange(out_size, dtype=jnp.float32)
        s = jnp.maximum((d + 0.5) * scale - 0.5, 0.0)
        i0 = jnp.minimum(jnp.floor(s).astype(jnp.int32), in_size - 1)
        i1 = jnp.minimum(i0 + 1, in_size - 1)
        w1 = s - i0.astype(jnp.float32)
        return i0, i1, 1.0 - w1, w1

    y0, y1, wy0, wy1 = src_idx(Ho, H)
    x0, x1, wx0, wx1 = src_idx(Wo, W)
    rows = (x[:, :, y0, :] * wy0[None, None, :, None]
            + x[:, :, y1, :] * wy1[None, None, :, None])      # (B, C, Ho, W)
    out = (rows[:, :, :, x0] * wx0[None, None, None, :]
           + rows[:, :, :, x1] * wx1[None, None, None, :])    # (B, C, Ho, Wo)
    return out


# ---------------------------------- main -------------------------------------

if __name__ == "__main__":
    B, C, H, W = 2, 4, 16, 16                                 # small shapes per the module
    key = jax.random.PRNGKey(0)
    x = jax.random.normal(key, (B, C, H, W), jnp.float32)

    # float32 path (default up_type='full' -> 2x both dims)
    out = upsample_pallas(x, target_shape=None, up_type='full')
    out = jax.block_until_ready(out)
    ref = upsample_reference(x, target_shape=None, up_type='full')
    assert out.shape == (B, C, 2 * H, 2 * W)
    max_err = float(jnp.max(jnp.abs(out.astype(jnp.float32) - ref)))
    assert max_err < 1e-5, max_err

    # bfloat16 path (native-dtype MXU GEMM, bf16 weights): looser tolerance.
    xb = x.astype(jnp.bfloat16)
    out_b = jax.block_until_ready(upsample_pallas(xb))
    ref_b = upsample_reference(xb.astype(jnp.float32))
    max_err_b = float(jnp.max(jnp.abs(out_b.astype(jnp.float32) - ref_b)))
    assert out_b.dtype == jnp.bfloat16 and max_err_b < 5e-2, max_err_b

    print("KERNEL_OK")
</pallas_src>

<mosaic_0001>
module attributes {stable_mosaic.version = 11 : i64} {
  func.func @upsample_kernel(%arg0: i32, %arg1: memref<8x256xf32, #tpu.memory_space<vmem>>, %arg2: memref<256x1024xbf16, #tpu.memory_space<vmem>>, %arg3: memref<8x1024xf32, #tpu.memory_space<vmem>>) attributes {dimension_semantics = [#tpu.dimension_semantics<parallel>], iteration_bounds = array<i64: 1>, scalar_prefetch = 0 : i64, scratch_operands = 0 : i64, tpu.core_type = #tpu.core_type<tc>, window_params = [{transform_indices = @transform_0, window_bounds = array<i64: 8, 256>}, {pipeline_mode = #tpu.pipeline_mode<synchronous>, transform_indices = @transform_1, window_bounds = array<i64: 256, 1024>}, {transform_indices = @transform_2, window_bounds = array<i64: 8, 1024>}]} {
    %c0 = arith.constant 0 : index
    %c0_0 = arith.constant 0 : index
    %0 = vector.load %arg1[%c0, %c0_0] : memref<8x256xf32, #tpu.memory_space<vmem>>, vector<8x256xf32>
    %c0_1 = arith.constant 0 : index
    %c0_2 = arith.constant 0 : index
    %1 = vector.load %arg2[%c0_1, %c0_2] : memref<256x1024xbf16, #tpu.memory_space<vmem>>, vector<256x1024xbf16>
    %2 = arith.extf %1 : vector<256x1024xbf16> to vector<256x1024xf32>
    %cst = arith.constant dense<0.000000e+00> : vector<8x1024xf32>
    %3 = tpu.matmul %0, %2, %cst {dimension_numbers = #tpu.dot_dimension_numbers<[1], [0], [0], [1], [0, 0, 1, 1], [], []>} : vector<8x256xf32>, vector<256x1024xf32>, vector<8x1024xf32> -> vector<8x1024xf32>
    %c0_3 = arith.constant 0 : index
    %c0_4 = arith.constant 0 : index
    %4 = vector.load %arg3[%c0_3, %c0_4] : memref<8x1024xf32, #tpu.memory_space<vmem>>, vector<8x1024xf32>
    tpu.vector_store %arg3[%c0_3, %c0_4], %3 {strides = array<i32>} : memref<8x1024xf32, #tpu.memory_space<vmem>>, vector<8x1024xf32>,
    return
  }
  func.func @transform_0(%arg0: i32) -> (i32, i32) {
    %c0_i32 = arith.constant 0 : i32
    %c0_i32_0 = arith.constant 0 : i32
    return %arg0, %c0_i32 : i32, i32
  }
  func.func @transform_1(%arg0: i32) -> (i32, i32) {
    %c0_i32 = arith.constant 0 : i32
    %c0_i32_0 = arith.constant 0 : i32
    %c0_i32_1 = arith.constant 0 : i32
    return %c0_i32, %c0_i32_0 : i32, i32
  }
  func.func @transform_2(%arg0: i32) -> (i32, i32) {
    %c0_i32 = arith.constant 0 : i32
    %c0_i32_0 = arith.constant 0 : i32
    return %arg0, %c0_i32 : i32, i32
  }
}

module attributes {stable_mosaic.version = 11 : i64} {
  func.func @upsample_kernel(%arg0: i32, %arg1: memref<8x256xf32, #tpu.memory_space<vmem>>, %arg2: memref<256x1024xbf16, #tpu.memory_space<vmem>>, %arg3: memref<8x1024xf32, #tpu.memory_space<vmem>>) attributes {dimension_semantics = [#tpu.dimension_semantics<parallel>], iteration_bounds = array<i64: 1>, scalar_prefetch = 0 : i64, scratch_operands = 0 : i64, tpu.core_type = #tpu.core_type<tc>, window_params = [{transform_indices = @transform_0, window_bounds = array<i64: 8, 256>}, {pipeline_mode = #tpu.pipeline_mode<synchronous>, transform_indices = @transform_1, window_bounds = array<i64: 256, 1024>}, {transform_indices = @transform_2, window_bounds = array<i64: 8, 1024>}]} {
    %c0 = arith.constant 0 : index
    %c0_0 = arith.constant 0 : index
    %0 = vector.load %arg1[%c0, %c0_0] : memref<8x256xf32, #tpu.memory_space<vmem>>, vector<8x256xf32>
    %c0_1 = arith.constant 0 : index
    %c0_2 = arith.constant 0 : index
    %1 = vector.load %arg2[%c0_1, %c0_2] : memref<256x1024xbf16, #tpu.memory_space<vmem>>, vector<256x1024xbf16>
    %2 = arith.extf %1 : vector<256x1024xbf16> to vector<256x1024xf32>
    %cst = arith.constant dense<0.000000e+00> : vector<8x1024xf32>
    %3 = tpu.matmul %0, %2, %cst {dimension_numbers = #tpu.dot_dimension_numbers<[1], [0], [0], [1], [0, 0, 1, 1], [], []>} : vector<8x256xf32>, vector<256x1024xf32>, vector<8x1024xf32> -> vector<8x1024xf32>
    %c0_3 = arith.constant 0 : index
    %c0_4 = arith.constant 0 : index
    %4 = vector.load %arg3[%c0_3, %c0_4] : memref<8x1024xf32, #tpu.memory_space<vmem>>, vector<8x1024xf32>
    tpu.vector_store %arg3[%c0_3, %c0_4], %3 {strides = array<i32>} : memref<8x1024xf32, #tpu.memory_space<vmem>>, vector<8x1024xf32>,
    return
  }
  func.func @transform_0(%arg0: i32) -> (i32, i32) {
    %c0_i32 = arith.constant 0 : i32
    %c0_i32_0 = arith.constant 0 : i32
    return %arg0, %c0_i32 : i32, i32
  }
  func.func @transform_1(%arg0: i32) -> (i32, i32) {
    %c0_i32 = arith.constant 0 : i32
    %c0_i32_0 = arith.constant 0 : i32
    %c0_i32_1 = arith.constant 0 : i32
    return %c0_i32, %c0_i32_0 : i32, i32
  }
  func.func @transform_2(%arg0: i32) -> (i32, i32) {
    %c0_i32 = arith.constant 0 : i32
    %c0_i32_0 = arith.constant 0 : i32
    return %arg0, %c0_i32 : i32, i32
  }
}

</mosaic_0001>

<bundles_post_ra>
// kernel: tpu_custom_call.1
= control target key start
LH: loop header
LB: loop body
LE: loop exit
PB: predicated region body
PF: predicated region fallthrough
CT: control target
= control target key end

     0   :  { %7 = vsyncpa [#allocation3], 0  ;;  %s844_s0 = inlined_call_operand.hbm [shape: f32[8,256], index: 0, kind: input, shape index: {}]   ;;  %s845_s1 = inlined_call_operand.hbm [shape: bf16[256,1024], index: 1, kind: input, shape index: {}]   ;;  %s846_s2 = inlined_call_operand.hbm [shape: f32[8,1024], index: 2, kind: output, shape index: {}]  }
   0x1   :  { %8 = vsyncpa [#allocation6], 0 }
   0x2   :  { %9 = vsyncpa [#allocation4], 0  ;;  %s803_s9 = smov [#allocation2]   ;;  %s804_s11 = smov [#allocation5]  }
   0x3   :  { %s16_s10 = sshll.u32 %s803_s9, 4  ;;  %s25_s12 = sshll.u32 %s804_s11, 4  ;;  %s17_s10 = int_to_ptr.vmem [resolvable:$true] %s16_s10  ;;  %s26_s12 = int_to_ptr.vmem [resolvable:$true] %s25_s12 }
   0x4   :  { %s745_s13 = scalar_lea.vmem %s17_s10, 256  ;;  %p750_p1 = scmp.lt.s32.totalorder %s17_s10, %s17_s10 }
   0x5   :  { %p746_p0 = scmp.ne.s32.totalorder %s17_s10, %s745_s13  ;;  %p751_p2 = scmp.lt.s32.totalorder %s745_s13, %s745_s13 }
   0x7   :  { %p752_p3 = por %p751_p2, %p750_p1 }
   0x9   :  { %p753_p4 = pnand %p752_p3, %p746_p0 }
   0xb   :  { %756 = shalt.err (!%p753_p4)
}
   0xc   :  { %19 = dma.hbm_to_vmem [thread:$0]  %s844_s0, 256, %s17_s10, [#allocation3]  }
   0xd   :  { %s765_s16 = scalar_lea.vmem %s26_s12, 16384  ;;  %p770_p6 = scmp.lt.s32.totalorder %s26_s12, %s26_s12 }
   0xe   :  { %p766_p5 = scmp.ne.s32.totalorder %s26_s12, %s765_s16  ;;  %p771_p7 = scmp.lt.s32.totalorder %s765_s16, %s765_s16 }
  0x10   :  { %p772_p8 = por %p771_p7, %p770_p6 }
  0x12   :  { %p773_p9 = pnand %p772_p8, %p766_p5 }
  0x14   :  { %776 = shalt.err (!%p773_p9)
}
  0x15   :  { %s805_s17 = smov 512   ;;  %s806_s18 = smov 32  }
  0x16   :  { %31 = dma.hbm_to_vmem [thread:$0]  %s845_s1, 16384, %s26_s12, [#allocation6], %s805_s17, %s805_s17, %s806_s18  }
  0x17   :  { %797 = dma.done.wait [#allocation3], 256  }
  0x18   :  { %798 = vsyncadd [#allocation3], 4294967040 }
  0x19   :  { %799 = dma.done.wait [#allocation6], 16384  }
  0x1a   :  { %800 = vsyncadd [#allocation6], 4294950912  ;;  %v100_v0 = vld [vmem:[#allocation5 + $0x1e0] sm:$0xff]  ;;  %v101_v1 = vld [vmem:[#allocation5 + $0x1e8] sm:$0xff]  ;;  %s807_s0 = smov [#allocation7]  }
  0x1b   :  { %v96_v2 = vld [vmem:[#allocation5 + $0x1c0] sm:$0xff]  ;;  %v289_v3 = vunpack.c.h.bf16 %v100_v0  ;;  %v291_v4 = vunpack.c.h.bf16 %v101_v1  ;;  %v288_v5 = vunpack.c.l.bf16 %v100_v0  ;;  %v290_v6 = vunpack.c.l.bf16 %v101_v1  ;;  %v97_v7 = vld [vmem:[#allocation5 + $0x1c8] sm:$0xff]  ;;  %s722_s1 = sshll.u32 %s807_s0, 4  ;;  %s723_s1 = int_to_ptr.vmem [resolvable:$true] %s722_s1 }
  0x1c   :  { %v92_v8 = vld [vmem:[#allocation5 + $0x1a0] sm:$0xff]  ;;  %v93_v9 = vld [vmem:[#allocation5 + $0x1a8] sm:$0xff]  ;;  %v281_v10 = vunpack.c.h.bf16 %v96_v2  ;;  %v283_v11 = vunpack.c.h.bf16 %v97_v7  ;;  %v280_v12 = vunpack.c.l.bf16 %v96_v2  ;;  %v282_v13 = vunpack.c.l.bf16 %v97_v7  ;;  %s777_s21 = scalar_lea.vmem %s723_s1, 1024  ;;  %p782_p11 = scmp.lt.s32.totalorder %s723_s1, %s723_s1 }
  0x1d   :  { %v88_v14 = vld [vmem:[#allocation5 + $0x180] sm:$0xff]  ;;  %v89_v15 = vld [vmem:[#allocation5 + $0x188] sm:$0xff]  ;;  %424 = vmatprep.subr.mxu0 %v289_v3  ;;  %495 = vmatprep.subr.mxu1 %v291_v4  ;;  %v273_v16 = vunpack.c.h.bf16 %v92_v8  ;;  %v275_v17 = vunpack.c.h.bf16 %v93_v9  ;;  %v272_v18 = vunpack.c.l.bf16 %v92_v8  ;;  %v274_v19 = vunpack.c.l.bf16 %v93_v9  ;;  %p778_p10 = scmp.ne.s32.totalorder %s723_s1, %s777_s21  ;;  %p783_p12 = scmp.lt.s32.totalorder %s777_s21, %s777_s21 }
  0x1e   :  { %425 = vmatpush1.msra.mxu0 %v288_v5  ;;  %496 = vmatpush1.msra.mxu1 %v290_v6  ;;  %v84_v20 = vld [vmem:[#allocation5 + $0x160] sm:$0xff]  ;;  %v85_v21 = vld [vmem:[#allocation5 + $0x168] sm:$0xff]  ;;  %v265_v22 = vunpack.c.h.bf16 %v88_v14  ;;  %v267_v23 = vunpack.c.h.bf16 %v89_v15  ;;  %v264_v24 = vunpack.c.l.bf16 %v88_v14  ;;  %v266_v25 = vunpack.c.l.bf16 %v89_v15 }
  0x1f   :  { %426 = vmatprep.subr.mxu0 %v281_v10  ;;  %497 = vmatprep.subr.mxu1 %v283_v11  ;;  %v80_v26 = vld [vmem:[#allocation5 + $0x140] sm:$0xff]  ;;  %v81_v27 = vld [vmem:[#allocation5 + $0x148] sm:$0xff]  ;;  %v257_v28 = vunpack.c.h.bf16 %v84_v20  ;;  %v259_v29 = vunpack.c.h.bf16 %v85_v21  ;;  %v256_v30 = vunpack.c.l.bf16 %v84_v20  ;;  %v258_v31 = vunpack.c.l.bf16 %v85_v21  ;;  %p784_p13 = por %p783_p12, %p782_p11 }
  0x20   :  { %427 = vmatpush1.msra.mxu0 %v280_v12  ;;  %498 = vmatpush1.msra.mxu1 %v282_v13  ;;  %v76_v32 = vld [vmem:[#allocation5 + $0x120] sm:$0xff]  ;;  %v77_v33 = vld [vmem:[#allocation5 + $0x128] sm:$0xff]  ;;  %v249_v34 = vunpack.c.h.bf16 %v80_v26  ;;  %v251_v35 = vunpack.c.h.bf16 %v81_v27  ;;  %v248_v36 = vunpack.c.l.bf16 %v80_v26  ;;  %v250_v37 = vunpack.c.l.bf16 %v81_v27 }
  0x21   :  { %428 = vmatprep.subr.mxu0 %v273_v16  ;;  %499 = vmatprep.subr.mxu1 %v275_v17  ;;  %v72_v38 = vld [vmem:[#allocation5 + $0x100] sm:$0xff]  ;;  %v73_v39 = vld [vmem:[#allocation5 + $0x108] sm:$0xff]  ;;  %v241_v40 = vunpack.c.h.bf16 %v76_v32  ;;  %v243_v41 = vunpack.c.h.bf16 %v77_v33  ;;  %v240_v42 = vunpack.c.l.bf16 %v76_v32  ;;  %v242_v43 = vunpack.c.l.bf16 %v77_v33  ;;  %p785_p0 = pnand %p784_p13, %p778_p10 }
  0x22   :  { %429 = vmatpush1.msra.mxu0 %v272_v18  ;;  %500 = vmatpush1.msra.mxu1 %v274_v19  ;;  %v68_v44 = vld [vmem:[#allocation5 + $0xe0] sm:$0xff]  ;;  %v69_v45 = vld [vmem:[#allocation5 + $0xe8] sm:$0xff]  ;;  %v233_v46 = vunpack.c.h.bf16 %v72_v38  ;;  %v235_v47 = vunpack.c.h.bf16 %v73_v39  ;;  %v232_v48 = vunpack.c.l.bf16 %v72_v38  ;;  %v234_v49 = vunpack.c.l.bf16 %v73_v39 }
  0x23   :  { %430 = vmatprep.subr.mxu0 %v265_v22  ;;  %501 = vmatprep.subr.mxu1 %v267_v23  ;;  %v64_v50 = vld [vmem:[#allocation5 + $0xc0] sm:$0xff]  ;;  %v65_v51 = vld [vmem:[#allocation5 + $0xc8] sm:$0xff]  ;;  %v225_v52 = vunpack.c.h.bf16 %v68_v44  ;;  %v227_v53 = vunpack.c.h.bf16 %v69_v45  ;;  %v224_v54 = vunpack.c.l.bf16 %v68_v44  ;;  %v226_v55 = vunpack.c.l.bf16 %v69_v45 }
  0x24   :  { %431 = vmatpush1.msra.mxu0 %v264_v24  ;;  %502 = vmatpush1.msra.mxu1 %v266_v25  ;;  %v60_v56 = vld [vmem:[#allocation5 + $0xa0] sm:$0xff]  ;;  %v61_v57 = vld [vmem:[#allocation5 + $0xa8] sm:$0xff]  ;;  %v217_v58 = vunpack.c.h.bf16 %v64_v50  ;;  %v219_v59 = vunpack.c.h.bf16 %v65_v51  ;;  %v216_v60 = vunpack.c.l.bf16 %v64_v50  ;;  %v218_v61 = vunpack.c.l.bf16 %v65_v51 }
  0x25   :  { %432 = vmatprep.subr.mxu0 %v257_v28  ;;  %503 = vmatprep.subr.mxu1 %v259_v29  ;;  %v56_v62 = vld [vmem:[#allocation5 + $0x80] sm:$0xff]  ;;  %v57_v63 = vld [vmem:[#allocation5 + $0x88] sm:$0xff]  ;;  %v209_v0 = vunpack.c.h.bf16 %v60_v56  ;;  %v211_v1 = vunpack.c.h.bf16 %v61_v57  ;;  %v208_v2 = vunpack.c.l.bf16 %v60_v56  ;;  %v210_v3 = vunpack.c.l.bf16 %v61_v57 }
  0x26   :  { %433 = vmatpush1.msra.mxu0 %v256_v30  ;;  %504 = vmatpush1.msra.mxu1 %v258_v31  ;;  %v52_v4 = vld [vmem:[#allocation5 + $0x60] sm:$0xff]  ;;  %v53_v5 = vld [vmem:[#allocation5 + $0x68] sm:$0xff]  ;;  %v201_v6 = vunpack.c.h.bf16 %v56_v62  ;;  %v203_v7 = vunpack.c.h.bf16 %v57_v63  ;;  %v200_v8 = vunpack.c.l.bf16 %v56_v62  ;;  %v202_v9 = vunpack.c.l.bf16 %v57_v63 }
  0x27   :  { %434 = vmatprep.subr.mxu0 %v249_v34  ;;  %505 = vmatprep.subr.mxu1 %v251_v35  ;;  %v48_v10 = vld [vmem:[#allocation5 + $0x40] sm:$0xff]  ;;  %v49_v11 = vld [vmem:[#allocation5 + $0x48] sm:$0xff]  ;;  %v193_v12 = vunpack.c.h.bf16 %v52_v4  ;;  %v195_v13 = vunpack.c.h.bf16 %v53_v5  ;;  %v192_v14 = vunpack.c.l.bf16 %v52_v4  ;;  %v194_v15 = vunpack.c.l.bf16 %v53_v5 }
  0x28   :  { %435 = vmatpush1.msra.mxu0 %v248_v36  ;;  %506 = vmatpush1.msra.mxu1 %v250_v37  ;;  %v44_v16 = vld [vmem:[#allocation5 + $0x20] sm:$0xff]  ;;  %v45_v17 = vld [vmem:[#allocation5 + $0x28] sm:$0xff]  ;;  %v185_v18 = vunpack.c.h.bf16 %v48_v10  ;;  %v187_v19 = vunpack.c.h.bf16 %v49_v11  ;;  %v184_v20 = vunpack.c.l.bf16 %v48_v10  ;;  %v186_v21 = vunpack.c.l.bf16 %v49_v11 }
  0x29   :  { %436 = vmatprep.subr.mxu0 %v241_v40  ;;  %507 = vmatprep.subr.mxu1 %v243_v41  ;;  %v40_v22 = vld [vmem:[#allocation5] sm:$0xff]  ;;  %v41_v23 = vld [vmem:[#allocation5 + $0x8] sm:$0xff]  ;;  %v177_v24 = vunpack.c.h.bf16 %v44_v16  ;;  %v179_v25 = vunpack.c.h.bf16 %v45_v17  ;;  %v176_v26 = vunpack.c.l.bf16 %v44_v16  ;;  %v178_v27 = vunpack.c.l.bf16 %v45_v17 }
  0x2a   :  { %437 = vmatpush1.msra.mxu0 %v240_v42  ;;  %508 = vmatpush1.msra.mxu1 %v242_v43  ;;  %v164_v28 = vld [vmem:[#allocation5 + $0x3e0] sm:$0xff]  ;;  %v165_v29 = vld [vmem:[#allocation5 + $0x3e8] sm:$0xff]  ;;  %v169_v30 = vunpack.c.h.bf16 %v40_v22  ;;  %v171_v31 = vunpack.c.h.bf16 %v41_v23  ;;  %v168_v32 = vunpack.c.l.bf16 %v40_v22  ;;  %v170_v33 = vunpack.c.l.bf16 %v41_v23 }
  0x2b   :  { %438 = vmatprep.subr.mxu0 %v233_v46  ;;  %509 = vmatprep.subr.mxu1 %v235_v47  ;;  %v160_v34 = vld [vmem:[#allocation5 + $0x3c0] sm:$0xff]  ;;  %v161_v35 = vld [vmem:[#allocation5 + $0x3c8] sm:$0xff]  ;;  %v417_v36 = vunpack.c.h.bf16 %v164_v28  ;;  %v419_v37 = vunpack.c.h.bf16 %v165_v29  ;;  %v416_v38 = vunpack.c.l.bf16 %v164_v28  ;;  %v418_v39 = vunpack.c.l.bf16 %v165_v29 }
  0x2c   :  { %439 = vmatpush1.msra.mxu0 %v232_v48  ;;  %510 = vmatpush1.msra.mxu1 %v234_v49  ;;  %v156_v40 = vld [vmem:[#allocation5 + $0x3a0] sm:$0xff]  ;;  %v157_v41 = vld [vmem:[#allocation5 + $0x3a8] sm:$0xff]  ;;  %v409_v42 = vunpack.c.h.bf16 %v160_v34  ;;  %v411_v43 = vunpack.c.h.bf16 %v161_v35  ;;  %v408_v44 = vunpack.c.l.bf16 %v160_v34  ;;  %v410_v45 = vunpack.c.l.bf16 %v161_v35 }
  0x2d   :  { %440 = vmatprep.subr.mxu0 %v225_v52  ;;  %511 = vmatprep.subr.mxu1 %v227_v53  ;;  %v152_v46 = vld [vmem:[#allocation5 + $0x380] sm:$0xff]  ;;  %v153_v47 = vld [vmem:[#allocation5 + $0x388] sm:$0xff]  ;;  %v401_v48 = vunpack.c.h.bf16 %v156_v40  ;;  %v403_v49 = vunpack.c.h.bf16 %v157_v41  ;;  %v400_v50 = vunpack.c.l.bf16 %v156_v40  ;;  %v402_v51 = vunpack.c.l.bf16 %v157_v41 }
  0x2e   :  { %441 = vmatpush1.msra.mxu0 %v224_v54  ;;  %512 = vmatpush1.msra.mxu1 %v226_v55  ;;  %v148_v52 = vld [vmem:[#allocation5 + $0x360] sm:$0xff]  ;;  %v149_v53 = vld [vmem:[#allocation5 + $0x368] sm:$0xff]  ;;  %v393_v54 = vunpack.c.h.bf16 %v152_v46  ;;  %v395_v55 = vunpack.c.h.bf16 %v153_v47  ;;  %v392_v56 = vunpack.c.l.bf16 %v152_v46  ;;  %v394_v57 = vunpack.c.l.bf16 %v153_v47 }
  0x2f   :  { %442 = vmatprep.subr.mxu0 %v217_v58  ;;  %513 = vmatprep.subr.mxu1 %v219_v59  ;;  %v144_v58 = vld [vmem:[#allocation5 + $0x340] sm:$0xff]  ;;  %v145_v59 = vld [vmem:[#allocation5 + $0x348] sm:$0xff]  ;;  %v384_v62 = vunpack.c.l.bf16 %v148_v52  ;;  %v386_v63 = vunpack.c.l.bf16 %v149_v53 }
  0x30   :  { %443 = vmatpush1.msra.mxu0 %v216_v60  ;;  %514 = vmatpush1.msra.mxu1 %v218_v61  ;;  %v385_v60 = vunpack.c.h.bf16 %v148_v52  ;;  %v387_v61 = vunpack.c.h.bf16 %v149_v53  ;;  %v376_v4 = vunpack.c.l.bf16 %v144_v58  ;;  %v378_v5 = vunpack.c.l.bf16 %v145_v59 }
  0x31   :  { %444 = vmatprep.subr.mxu0 %v209_v0  ;;  %515 = vmatprep.subr.mxu1 %v211_v1  ;;  %v140_v0 = vld [vmem:[#allocation5 + $0x320] sm:$0xff]  ;;  %v141_v1 = vld [vmem:[#allocation5 + $0x328] sm:$0xff] }
  0x32   :  { %445 = vmatpush1.msra.mxu0 %v208_v2  ;;  %516 = vmatpush1.msra.mxu1 %v210_v3  ;;  %v377_v2 = vunpack.c.h.bf16 %v144_v58  ;;  %v379_v3 = vunpack.c.h.bf16 %v145_v59  ;;  %v368_v10 = vunpack.c.l.bf16 %v140_v0  ;;  %v370_v11 = vunpack.c.l.bf16 %v141_v1 }
  0x33   :  { %446 = vmatprep.subr.mxu0 %v201_v6  ;;  %517 = vmatprep.subr.mxu1 %v203_v7  ;;  %v136_v6 = vld [vmem:[#allocation5 + $0x300] sm:$0xff]  ;;  %v137_v7 = vld [vmem:[#allocation5 + $0x308] sm:$0xff] }
  0x34   :  { %447 = vmatpush1.msra.mxu0 %v200_v8  ;;  %518 = vmatpush1.msra.mxu1 %v202_v9  ;;  %v369_v8 = vunpack.c.h.bf16 %v140_v0  ;;  %v371_v9 = vunpack.c.h.bf16 %v141_v1  ;;  %v360_v16 = vunpack.c.l.bf16 %v136_v6  ;;  %v362_v17 = vunpack.c.l.bf16 %v137_v7  ;;  %v103_v0 = vld [vmem:[#allocation5 + $0x1f8] sm:$0xff] }
  0x35   :  { %448 = vmatprep.subr.mxu0 %v193_v12  ;;  %519 = vmatprep.subr.mxu1 %v195_v13  ;;  %v132_v12 = vld [vmem:[#allocation5 + $0x2e0] sm:$0xff]  ;;  %v133_v13 = vld [vmem:[#allocation5 + $0x2e8] sm:$0xff]  ;;  %v829_v1 = vld [vmem:[#allocation2 + $0x8] sm:$0xff] }
  0x36   :  { %449 = vmatpush1.msra.mxu0 %v192_v14  ;;  %520 = vmatpush1.msra.mxu1 %v194_v15  ;;  %v361_v14 = vunpack.c.h.bf16 %v136_v6  ;;  %v363_v15 = vunpack.c.h.bf16 %v137_v7  ;;  %v352_v22 = vunpack.c.l.bf16 %v132_v12  ;;  %v354_v23 = vunpack.c.l.bf16 %v133_v13 }
  0x37   :  { %450 = vmatprep.subr.mxu0 %v185_v18  ;;  %521 = vmatprep.subr.mxu1 %v187_v19  ;;  %v128_v18 = vld [vmem:[#allocation5 + $0x2c0] sm:$0xff]  ;;  %v129_v19 = vld [vmem:[#allocation5 + $0x2c8] sm:$0xff]  ;;  %v295_v7 = vunpack.c.h.bf16 %v103_v0 }
  0x38   :  { %451 = vmatpush1.msra.mxu0 %v184_v20  ;;  %522 = vmatpush1.msra.mxu1 %v186_v21  ;;  %v353_v20 = vunpack.c.h.bf16 %v132_v12  ;;  %v355_v21 = vunpack.c.h.bf16 %v133_v13  ;;  %v344_v28 = vunpack.c.l.bf16 %v128_v18  ;;  %v346_v29 = vunpack.c.l.bf16 %v129_v19 }
  0x39   :  { %452 = vmatprep.subr.mxu0 %v177_v24  ;;  %523 = vmatprep.subr.mxu1 %v179_v25  ;;  %v124_v24 = vld [vmem:[#allocation5 + $0x2a0] sm:$0xff]  ;;  %v125_v25 = vld [vmem:[#allocation5 + $0x2a8] sm:$0xff] }
  0x3a   :  { %453 = vmatpush1.msra.mxu0 %v176_v26  ;;  %524 = vmatpush1.msra.mxu1 %v178_v27  ;;  %v345_v26 = vunpack.c.h.bf16 %v128_v18  ;;  %v347_v27 = vunpack.c.h.bf16 %v129_v19  ;;  %v336_v34 = vunpack.c.l.bf16 %v124_v24  ;;  %v338_v35 = vunpack.c.l.bf16 %v125_v25 }
  0x3b   :  { %454 = vmatprep.subr.mxu0 %v169_v30  ;;  %525 = vmatprep.subr.mxu1 %v171_v31  ;;  %v120_v30 = vld [vmem:[#allocation5 + $0x280] sm:$0xff]  ;;  %v121_v31 = vld [vmem:[#allocation5 + $0x288] sm:$0xff] }
  0x3c   :  { %455 = vmatpush1.msra.mxu0 %v168_v32  ;;  %526 = vmatpush1.msra.mxu1 %v170_v33  ;;  %v337_v32 = vunpack.c.h.bf16 %v124_v24  ;;  %v339_v33 = vunpack.c.h.bf16 %v125_v25  ;;  %v328_v40 = vunpack.c.l.bf16 %v120_v30  ;;  %v330_v41 = vunpack.c.l.bf16 %v121_v31 }
  0x3d   :  { %456 = vmatprep.subr.mxu0 %v417_v36  ;;  %527 = vmatprep.subr.mxu1 %v419_v37  ;;  %v116_v36 = vld [vmem:[#allocation5 + $0x260] sm:$0xff]  ;;  %v117_v37 = vld [vmem:[#allocation5 + $0x268] sm:$0xff] }
  0x3e   :  { %457 = vmatpush2.msra.mxu0 %v416_v38  ;;  %528 = vmatpush2.msra.mxu1 %v418_v39  ;;  %v329_v38 = vunpack.c.h.bf16 %v120_v30  ;;  %v331_v39 = vunpack.c.h.bf16 %v121_v31  ;;  %v320_v46 = vunpack.c.l.bf16 %v116_v36  ;;  %v322_v47 = vunpack.c.l.bf16 %v117_v37 }
  0x3f   :  { %458 = vmatprep.subr.mxu0 %v409_v42  ;;  %529 = vmatprep.subr.mxu1 %v411_v43  ;;  %v112_v42 = vld [vmem:[#allocation5 + $0x240] sm:$0xff]  ;;  %v113_v43 = vld [vmem:[#allocation5 + $0x248] sm:$0xff] }
  0x40   :  { %459 = vmatpush2.msra.mxu0 %v408_v44  ;;  %530 = vmatpush2.msra.mxu1 %v410_v45  ;;  %v321_v44 = vunpack.c.h.bf16 %v116_v36  ;;  %v323_v45 = vunpack.c.h.bf16 %v117_v37  ;;  %v312_v52 = vunpack.c.l.bf16 %v112_v42  ;;  %v314_v53 = vunpack.c.l.bf16 %v113_v43 }
  0x41   :  { %460 = vmatprep.subr.mxu0 %v401_v48  ;;  %531 = vmatprep.subr.mxu1 %v403_v49  ;;  %v108_v48 = vld [vmem:[#allocation5 + $0x220] sm:$0xff]  ;;  %v109_v49 = vld [vmem:[#allocation5 + $0x228] sm:$0xff] }
  0x42   :  { %461 = vmatpush2.msra.mxu0 %v400_v50  ;;  %532 = vmatpush2.msra.mxu1 %v402_v51  ;;  %v313_v50 = vunpack.c.h.bf16 %v112_v42  ;;  %v315_v51 = vunpack.c.h.bf16 %v113_v43  ;;  %v304_v58 = vunpack.c.l.bf16 %v108_v48  ;;  %v306_v59 = vunpack.c.l.bf16 %v109_v49 }
  0x43   :  { %462 = vmatprep.subr.mxu0 %v393_v54  ;;  %533 = vmatprep.subr.mxu1 %v395_v55  ;;  %v104_v54 = vld [vmem:[#allocation5 + $0x200] sm:$0xff]  ;;  %v105_v55 = vld [vmem:[#allocation5 + $0x208] sm:$0xff] }
  0x44   :  { %463 = vmatpush2.msra.mxu0 %v392_v56  ;;  %534 = vmatpush2.msra.mxu1 %v394_v57  ;;  %v305_v56 = vunpack.c.h.bf16 %v108_v48  ;;  %v307_v57 = vunpack.c.h.bf16 %v109_v49 }
  0x45   :  { %464 = vmatprep.subr.mxu0 %v385_v60  ;;  %535 = vmatprep.subr.mxu1 %v387_v61  ;;  %v297_v60 = vunpack.c.h.bf16 %v104_v54  ;;  %v299_v61 = vunpack.c.h.bf16 %v105_v55 }
  0x46   :  { %465 = vmatpush2.msra.mxu0 %v384_v62  ;;  %536 = vmatpush2.msra.mxu1 %v386_v63  ;;  %v296_v62 = vunpack.c.l.bf16 %v104_v54  ;;  %v102_v63 = vld [vmem:[#allocation5 + $0x1f0] sm:$0xff] }
  0x47   :  { %466 = vmatprep.subr.mxu0 %v377_v2  ;;  %537 = vmatprep.subr.mxu1 %v379_v3  ;;  %v298_v2 = vunpack.c.l.bf16 %v105_v55  ;;  %v98_v3 = vld [vmem:[#allocation5 + $0x1d0] sm:$0xff]  ;;  %v293_v6 = vunpack.c.h.bf16 %v102_v63 }
  0x48   :  { %467 = vmatpush2.msra.mxu0 %v376_v4  ;;  %538 = vmatpush2.msra.mxu1 %v378_v5  ;;  %v99_v4 = vld [vmem:[#allocation5 + $0x1d8] sm:$0xff]  ;;  %v831_v5 = vld [vmem:[#allocation2] sm:$0xff]  ;;  %v285_v12 = vunpack.c.h.bf16 %v98_v3 }
  0x49   :  { %468 = vmatprep.subr.mxu0 %v369_v8  ;;  %539 = vmatprep.subr.mxu1 %v371_v9  ;;  %v292_v8 = vunpack.c.l.bf16 %v102_v63  ;;  %v294_v9 = vunpack.c.l.bf16 %v103_v0  ;;  %v287_v13 = vunpack.c.h.bf16 %v99_v4  ;;  %v58_v0 = vld [vmem:[#allocation5 + $0x90] sm:$0xff] }
  0x4a   :  { %469 = vmatpush2.msra.mxu0 %v368_v10  ;;  %540 = vmatpush2.msra.mxu1 %v370_v11  ;;  %v94_v10 = vld [vmem:[#allocation5 + $0x1b0] sm:$0xff]  ;;  %v95_v11 = vld [vmem:[#allocation5 + $0x1b8] sm:$0xff] }
  0x4b   :  { %470 = vmatprep.subr.mxu0 %v361_v14  ;;  %541 = vmatprep.subr.mxu1 %v363_v15  ;;  %v284_v14 = vunpack.c.l.bf16 %v98_v3  ;;  %v286_v15 = vunpack.c.l.bf16 %v99_v4  ;;  %v277_v18 = vunpack.c.h.bf16 %v94_v10  ;;  %v279_v19 = vunpack.c.h.bf16 %v95_v11 }
  0x4c   :  { %471 = vmatpush2.msra.mxu0 %v360_v16  ;;  %542 = vmatpush2.msra.mxu1 %v362_v17  ;;  %v90_v16 = vld [vmem:[#allocation5 + $0x190] sm:$0xff]  ;;  %v91_v17 = vld [vmem:[#allocation5 + $0x198] sm:$0xff] }
  0x4d   :  { %472 = vmatprep.subr.mxu0 %v353_v20  ;;  %543 = vmatprep.subr.mxu1 %v355_v21  ;;  %v276_v20 = vunpack.c.l.bf16 %v94_v10  ;;  %v278_v21 = vunpack.c.l.bf16 %v95_v11  ;;  %v269_v24 = vunpack.c.h.bf16 %v90_v16  ;;  %v271_v25 = vunpack.c.h.bf16 %v91_v17 }
  0x4e   :  { %473 = vmatpush2.msra.mxu0 %v352_v22  ;;  %544 = vmatpush2.msra.mxu1 %v354_v23  ;;  %v86_v22 = vld [vmem:[#allocation5 + $0x170] sm:$0xff]  ;;  %v87_v23 = vld [vmem:[#allocation5 + $0x178] sm:$0xff]  ;;  %v205_v10 = vunpack.c.h.bf16 %v58_v0 }
  0x4f   :  { %474 = vmatprep.subr.mxu0 %v345_v26  ;;  %545 = vmatprep.subr.mxu1 %v347_v27  ;;  %v268_v26 = vunpack.c.l.bf16 %v90_v16  ;;  %v270_v27 = vunpack.c.l.bf16 %v91_v17  ;;  %v261_v30 = vunpack.c.h.bf16 %v86_v22  ;;  %v263_v31 = vunpack.c.h.bf16 %v87_v23 }
  0x50   :  { %475 = vmatpush2.msra.mxu0 %v344_v28  ;;  %546 = vmatpush2.msra.mxu1 %v346_v29  ;;  %v82_v28 = vld [vmem:[#allocation5 + $0x150] sm:$0xff]  ;;  %v83_v29 = vld [vmem:[#allocation5 + $0x158] sm:$0xff] }
  0x51   :  { %476 = vmatprep.subr.mxu0 %v337_v32  ;;  %547 = vmatprep.subr.mxu1 %v339_v33  ;;  %v260_v32 = vunpack.c.l.bf16 %v86_v22  ;;  %v262_v33 = vunpack.c.l.bf16 %v87_v23  ;;  %v253_v36 = vunpack.c.h.bf16 %v82_v28  ;;  %v255_v37 = vunpack.c.h.bf16 %v83_v29 }
  0x52   :  { %477 = vmatpush2.msra.mxu0 %v336_v34  ;;  %548 = vmatpush2.msra.mxu1 %v338_v35  ;;  %v78_v34 = vld [vmem:[#allocation5 + $0x130] sm:$0xff]  ;;  %v79_v35 = vld [vmem:[#allocation5 + $0x138] sm:$0xff] }
  0x53   :  { %478 = vmatprep.subr.mxu0 %v329_v38  ;;  %549 = vmatprep.subr.mxu1 %v331_v39  ;;  %v252_v38 = vunpack.c.l.bf16 %v82_v28  ;;  %v254_v39 = vunpack.c.l.bf16 %v83_v29  ;;  %v245_v42 = vunpack.c.h.bf16 %v78_v34  ;;  %v247_v43 = vunpack.c.h.bf16 %v79_v35 }
  0x54   :  { %479 = vmatpush2.msra.mxu0 %v328_v40  ;;  %550 = vmatpush2.msra.mxu1 %v330_v41  ;;  %v74_v40 = vld [vmem:[#allocation5 + $0x110] sm:$0xff]  ;;  %v75_v41 = vld [vmem:[#allocation5 + $0x118] sm:$0xff] }
  0x55   :  { %480 = vmatprep.subr.mxu0 %v321_v44  ;;  %551 = vmatprep.subr.mxu1 %v323_v45  ;;  %v244_v44 = vunpack.c.l.bf16 %v78_v34  ;;  %v246_v45 = vunpack.c.l.bf16 %v79_v35  ;;  %v237_v48 = vunpack.c.h.bf16 %v74_v40  ;;  %v239_v49 = vunpack.c.h.bf16 %v75_v41 }
  0x56   :  { %481 = vmatpush2.msra.mxu0 %v320_v46  ;;  %552 = vmatpush2.msra.mxu1 %v322_v47  ;;  %v70_v46 = vld [vmem:[#allocation5 + $0xf0] sm:$0xff]  ;;  %v71_v47 = vld [vmem:[#allocation5 + $0xf8] sm:$0xff] }
  0x57   :  { %482 = vmatprep.subr.mxu0 %v313_v50  ;;  %553 = vmatprep.subr.mxu1 %v315_v51  ;;  %v236_v50 = vunpack.c.l.bf16 %v74_v40  ;;  %v238_v51 = vunpack.c.l.bf16 %v75_v41  ;;  %v229_v54 = vunpack.c.h.bf16 %v70_v46  ;;  %v231_v55 = vunpack.c.h.bf16 %v71_v47 }
  0x58   :  { %483 = vmatpush2.msra.mxu0 %v312_v52  ;;  %554 = vmatpush2.msra.mxu1 %v314_v53  ;;  %v66_v52 = vld [vmem:[#allocation5 + $0xd0] sm:$0xff]  ;;  %v67_v53 = vld [vmem:[#allocation5 + $0xd8] sm:$0xff] }
  0x59   :  { %484 = vmatprep.subr.mxu0 %v305_v56  ;;  %555 = vmatprep.subr.mxu1 %v307_v57  ;;  %v228_v56 = vunpack.c.l.bf16 %v70_v46  ;;  %v230_v57 = vunpack.c.l.bf16 %v71_v47  ;;  %v222_v63 = vunpack.c.l.bf16 %v67_v53 }
  0x5a   :  { %485 = vmatpush2.msra.mxu0 %v304_v58  ;;  %556 = vmatpush2.msra.mxu1 %v306_v59  ;;  %v62_v58 = vld [vmem:[#allocation5 + $0xb0] sm:$0xff]  ;;  %v63_v59 = vld [vmem:[#allocation5 + $0xb8] sm:$0xff] }
  0x5b   :  { %486 = vmatprep.subr.mxu0 %v297_v60  ;;  %557 = vmatprep.subr.mxu1 %v299_v61  ;;  %v221_v60 = vunpack.c.h.bf16 %v66_v52  ;;  %v223_v61 = vunpack.c.h.bf16 %v67_v53  ;;  %v213_v3 = vunpack.c.h.bf16 %v62_v58  ;;  %v215_v4 = vunpack.c.h.bf16 %v63_v59 }
  0x5c   :  { %487 = vmatpush2.msra.mxu0 %v296_v62  ;;  %488 = vmatprep.mubr.f32.mxu0 %v829_v1  ;;  %v220_v62 = vunpack.c.l.bf16 %v66_v52 }
  0x5d   :  { %558 = vmatpush2.msra.mxu1 %v298_v2  ;;  %559 = vmatprep.mubr.f32.mxu1 %v829_v1  ;;  %v59_v2 = vld [vmem:[#allocation5 + $0x98] sm:$0xff] }
  0x5e   :  { %489 = vmatmul.mubr.f32.vlgmr.msra.gmra.mxu0 %v831_v5  ;;  %560 = vmatmul.mubr.f32.vlgmr.msra.gmra.mxu1 %v831_v5  ;;  %v207_v11 = vunpack.c.h.bf16 %v59_v2 }
  0x5f   :  { %566 = vmatprep.subr.mxu0 %v293_v6  ;;  %637 = vmatprep.subr.mxu1 %v295_v7  ;;  %v212_v6 = vunpack.c.l.bf16 %v62_v58  ;;  %v214_v7 = vunpack.c.l.bf16 %v63_v59 }
  0x60   :  { %567 = vmatpush1.msra.mxu0 %v292_v8  ;;  %638 = vmatpush1.msra.mxu1 %v294_v9  ;;  %v54_v8 = vld [vmem:[#allocation5 + $0x70] sm:$0xff]  ;;  %v55_v9 = vld [vmem:[#allocation5 + $0x78] sm:$0xff] }
  0x61   :  { %568 = vmatprep.subr.mxu0 %v285_v12  ;;  %639 = vmatprep.subr.mxu1 %v287_v13  ;;  %v204_v12 = vunpack.c.l.bf16 %v58_v0  ;;  %v206_v13 = vunpack.c.l.bf16 %v59_v2  ;;  %v197_v16 = vunpack.c.h.bf16 %v54_v8  ;;  %v199_v17 = vunpack.c.h.bf16 %v55_v9 }
  0x62   :  { %569 = vmatpush1.msra.mxu0 %v284_v14  ;;  %640 = vmatpush1.msra.mxu1 %v286_v15  ;;  %v50_v14 = vld [vmem:[#allocation5 + $0x50] sm:$0xff]  ;;  %v51_v15 = vld [vmem:[#allocation5 + $0x58] sm:$0xff] }
  0x63   :  { %570 = vmatprep.subr.mxu0 %v277_v18  ;;  %641 = vmatprep.subr.mxu1 %v279_v19  ;;  %v196_v18 = vunpack.c.l.bf16 %v54_v8  ;;  %v198_v19 = vunpack.c.l.bf16 %v55_v9  ;;  %v189_v22 = vunpack.c.h.bf16 %v50_v14  ;;  %v191_v23 = vunpack.c.h.bf16 %v51_v15 }
  0x64   :  { %571 = vmatpush1.msra.mxu0 %v276_v20  ;;  %642 = vmatpush1.msra.mxu1 %v278_v21  ;;  %v46_v20 = vld [vmem:[#allocation5 + $0x30] sm:$0xff]  ;;  %v47_v21 = vld [vmem:[#allocation5 + $0x38] sm:$0xff] }
  0x65   :  { %572 = vmatprep.subr.mxu0 %v269_v24  ;;  %643 = vmatprep.subr.mxu1 %v271_v25  ;;  %v188_v24 = vunpack.c.l.bf16 %v50_v14  ;;  %v190_v25 = vunpack.c.l.bf16 %v51_v15  ;;  %v181_v28 = vunpack.c.h.bf16 %v46_v20  ;;  %v183_v29 = vunpack.c.h.bf16 %v47_v21 }
  0x66   :  { %573 = vmatpush1.msra.mxu0 %v268_v26  ;;  %644 = vmatpush1.msra.mxu1 %v270_v27  ;;  %v42_v26 = vld [vmem:[#allocation5 + $0x10] sm:$0xff]  ;;  %v43_v27 = vld [vmem:[#allocation5 + $0x18] sm:$0xff] }
  0x67   :  { %574 = vmatprep.subr.mxu0 %v261_v30  ;;  %645 = vmatprep.subr.mxu1 %v263_v31  ;;  %v180_v30 = vunpack.c.l.bf16 %v46_v20  ;;  %v182_v31 = vunpack.c.l.bf16 %v47_v21  ;;  %v173_v34 = vunpack.c.h.bf16 %v42_v26  ;;  %v175_v35 = vunpack.c.h.bf16 %v43_v27 }
  0x68   :  { %575 = vmatpush1.msra.mxu0 %v260_v32  ;;  %646 = vmatpush1.msra.mxu1 %v262_v33  ;;  %v166_v32 = vld [vmem:[#allocation5 + $0x3f0] sm:$0xff]  ;;  %v167_v33 = vld [vmem:[#allocation5 + $0x3f8] sm:$0xff] }
  0x69   :  { %576 = vmatprep.subr.mxu0 %v253_v36  ;;  %647 = vmatprep.subr.mxu1 %v255_v37  ;;  %v172_v36 = vunpack.c.l.bf16 %v42_v26  ;;  %v174_v37 = vunpack.c.l.bf16 %v43_v27  ;;  %v421_v40 = vunpack.c.h.bf16 %v166_v32  ;;  %v423_v41 = vunpack.c.h.bf16 %v167_v33 }
  0x6a   :  { %577 = vmatpush1.msra.mxu0 %v252_v38  ;;  %648 = vmatpush1.msra.mxu1 %v254_v39  ;;  %v162_v38 = vld [vmem:[#allocation5 + $0x3d0] sm:$0xff]  ;;  %v163_v39 = vld [vmem:[#allocation5 + $0x3d8] sm:$0xff] }
  0x6b   :  { %578 = vmatprep.subr.mxu0 %v245_v42  ;;  %649 = vmatprep.subr.mxu1 %v247_v43  ;;  %v420_v42 = vunpack.c.l.bf16 %v166_v32  ;;  %v422_v43 = vunpack.c.l.bf16 %v167_v33  ;;  %v413_v46 = vunpack.c.h.bf16 %v162_v38  ;;  %v415_v47 = vunpack.c.h.bf16 %v163_v39 }
  0x6c   :  { %579 = vmatpush1.msra.mxu0 %v244_v44  ;;  %650 = vmatpush1.msra.mxu1 %v246_v45  ;;  %v158_v44 = vld [vmem:[#allocation5 + $0x3b0] sm:$0xff]  ;;  %v159_v45 = vld [vmem:[#allocation5 + $0x3b8] sm:$0xff] }
  0x6d   :  { %580 = vmatprep.subr.mxu0 %v237_v48  ;;  %651 = vmatprep.subr.mxu1 %v239_v49  ;;  %v412_v48 = vunpack.c.l.bf16 %v162_v38  ;;  %v414_v49 = vunpack.c.l.bf16 %v163_v39  ;;  %v405_v52 = vunpack.c.h.bf16 %v158_v44  ;;  %v407_v53 = vunpack.c.h.bf16 %v159_v45 }
  0x6e   :  { %581 = vmatpush1.msra.mxu0 %v236_v50  ;;  %652 = vmatpush1.msra.mxu1 %v238_v51  ;;  %v154_v50 = vld [vmem:[#allocation5 + $0x390] sm:$0xff]  ;;  %v155_v51 = vld [vmem:[#allocation5 + $0x398] sm:$0xff] }
  0x6f   :  { %582 = vmatprep.subr.mxu0 %v229_v54  ;;  %653 = vmatprep.subr.mxu1 %v231_v55  ;;  %v404_v54 = vunpack.c.l.bf16 %v158_v44  ;;  %v406_v55 = vunpack.c.l.bf16 %v159_v45  ;;  %v397_v58 = vunpack.c.h.bf16 %v154_v50  ;;  %v399_v59 = vunpack.c.h.bf16 %v155_v51 }
  0x70   :  { %583 = vmatpush1.msra.mxu0 %v228_v56  ;;  %654 = vmatpush1.msra.mxu1 %v230_v57  ;;  %v150_v56 = vld [vmem:[#allocation5 + $0x370] sm:$0xff]  ;;  %v151_v57 = vld [vmem:[#allocation5 + $0x378] sm:$0xff] }
  0x71   :  { %584 = vmatprep.subr.mxu0 %v221_v60  ;;  %655 = vmatprep.subr.mxu1 %v223_v61  ;;  %v396_v60 = vunpack.c.l.bf16 %v154_v50  ;;  %v398_v61 = vunpack.c.l.bf16 %v155_v51  ;;  %v389_v0 = vunpack.c.h.bf16 %v150_v56  ;;  %v391_v2 = vunpack.c.h.bf16 %v151_v57 }
  0x72   :  { %585 = vmatpush1.msra.mxu0 %v220_v62  ;;  %656 = vmatpush1.msra.mxu1 %v222_v63  ;;  %v146_v62 = vld [vmem:[#allocation5 + $0x350] sm:$0xff]  ;;  %v147_v63 = vld [vmem:[#allocation5 + $0x358] sm:$0xff] }
  0x73   :  { %586 = vmatprep.subr.mxu0 %v213_v3  ;;  %657 = vmatprep.subr.mxu1 %v215_v4  ;;  %v388_v3 = vunpack.c.l.bf16 %v150_v56  ;;  %v390_v4 = vunpack.c.l.bf16 %v151_v57  ;;  %v381_v8 = vunpack.c.h.bf16 %v146_v62  ;;  %v383_v9 = vunpack.c.h.bf16 %v147_v63 }
  0x74   :  { %587 = vmatpush1.msra.mxu0 %v212_v6  ;;  %658 = vmatpush1.msra.mxu1 %v214_v7  ;;  %v142_v6 = vld [vmem:[#allocation5 + $0x330] sm:$0xff]  ;;  %v143_v7 = vld [vmem:[#allocation5 + $0x338] sm:$0xff] }
  0x75   :  { %588 = vmatprep.subr.mxu0 %v205_v10  ;;  %659 = vmatprep.subr.mxu1 %v207_v11  ;;  %v380_v10 = vunpack.c.l.bf16 %v146_v62  ;;  %v382_v11 = vunpack.c.l.bf16 %v147_v63  ;;  %v373_v14 = vunpack.c.h.bf16 %v142_v6  ;;  %v375_v15 = vunpack.c.h.bf16 %v143_v7 }
  0x76   :  { %589 = vmatpush1.msra.mxu0 %v204_v12  ;;  %660 = vmatpush1.msra.mxu1 %v206_v13  ;;  %v138_v12 = vld [vmem:[#allocation5 + $0x310] sm:$0xff]  ;;  %v139_v13 = vld [vmem:[#allocation5 + $0x318] sm:$0xff] }
  0x77   :  { %590 = vmatprep.subr.mxu0 %v197_v16  ;;  %661 = vmatprep.subr.mxu1 %v199_v17  ;;  %v372_v16 = vunpack.c.l.bf16 %v142_v6  ;;  %v374_v17 = vunpack.c.l.bf16 %v143_v7  ;;  %v365_v20 = vunpack.c.h.bf16 %v138_v12  ;;  %v367_v21 = vunpack.c.h.bf16 %v139_v13 }
  0x78   :  { %591 = vmatpush1.msra.mxu0 %v196_v18  ;;  %662 = vmatpush1.msra.mxu1 %v198_v19  ;;  %v134_v18 = vld [vmem:[#allocation5 + $0x2f0] sm:$0xff]  ;;  %v135_v19 = vld [vmem:[#allocation5 + $0x2f8] sm:$0xff] }
  0x79   :  { %592 = vmatprep.subr.mxu0 %v189_v22  ;;  %663 = vmatprep.subr.mxu1 %v191_v23  ;;  %v364_v22 = vunpack.c.l.bf16 %v138_v12  ;;  %v366_v23 = vunpack.c.l.bf16 %v139_v13  ;;  %v357_v26 = vunpack.c.h.bf16 %v134_v18  ;;  %v359_v27 = vunpack.c.h.bf16 %v135_v19 }
  0x7a   :  { %593 = vmatpush1.msra.mxu0 %v188_v24  ;;  %664 = vmatpush1.msra.mxu1 %v190_v25  ;;  %v130_v24 = vld [vmem:[#allocation5 + $0x2d0] sm:$0xff]  ;;  %v131_v25 = vld [vmem:[#allocation5 + $0x2d8] sm:$0xff] }
  0x7b   :  { %594 = vmatprep.subr.mxu0 %v181_v28  ;;  %665 = vmatprep.subr.mxu1 %v183_v29  ;;  %v356_v28 = vunpack.c.l.bf16 %v134_v18  ;;  %v358_v29 = vunpack.c.l.bf16 %v135_v19  ;;  %v349_v32 = vunpack.c.h.bf16 %v130_v24  ;;  %v351_v33 = vunpack.c.h.bf16 %v131_v25 }
  0x7c   :  { %595 = vmatpush1.msra.mxu0 %v180_v30  ;;  %666 = vmatpush1.msra.mxu1 %v182_v31  ;;  %v126_v30 = vld [vmem:[#allocation5 + $0x2b0] sm:$0xff]  ;;  %v127_v31 = vld [vmem:[#allocation5 + $0x2b8] sm:$0xff] }
  0x7d   :  { %596 = vmatprep.subr.mxu0 %v173_v34  ;;  %667 = vmatprep.subr.mxu1 %v175_v35  ;;  %v348_v34 = vunpack.c.l.bf16 %v130_v24  ;;  %v350_v35 = vunpack.c.l.bf16 %v131_v25  ;;  %v341_v38 = vunpack.c.h.bf16 %v126_v30  ;;  %v343_v39 = vunpack.c.h.bf16 %v127_v31 }
  0x7e   :  { %597 = vmatpush1.msra.mxu0 %v172_v36  ;;  %668 = vmatpush1.msra.mxu1 %v174_v37  ;;  %v122_v36 = vld [vmem:[#allocation5 + $0x290] sm:$0xff]  ;;  %v123_v37 = vld [vmem:[#allocation5 + $0x298] sm:$0xff] }
  0x7f   :  { %598 = vmatprep.subr.mxu0 %v421_v40  ;;  %669 = vmatprep.subr.mxu1 %v423_v41  ;;  %v340_v40 = vunpack.c.l.bf16 %v126_v30  ;;  %v342_v41 = vunpack.c.l.bf16 %v127_v31  ;;  %v333_v44 = vunpack.c.h.bf16 %v122_v36  ;;  %v335_v45 = vunpack.c.h.bf16 %v123_v37 }
  0x80   :  { %599 = vmatpush2.msra.mxu0 %v420_v42  ;;  %670 = vmatpush2.msra.mxu1 %v422_v43  ;;  %v118_v42 = vld [vmem:[#allocation5 + $0x270] sm:$0xff]  ;;  %v119_v43 = vld [vmem:[#allocation5 + $0x278] sm:$0xff] }
  0x81   :  { %600 = vmatprep.subr.mxu0 %v413_v46  ;;  %671 = vmatprep.subr.mxu1 %v415_v47  ;;  %v332_v46 = vunpack.c.l.bf16 %v122_v36  ;;  %v334_v47 = vunpack.c.l.bf16 %v123_v37  ;;  %v325_v50 = vunpack.c.h.bf16 %v118_v42  ;;  %v327_v51 = vunpack.c.h.bf16 %v119_v43 }
  0x82   :  { %601 = vmatpush2.msra.mxu0 %v412_v48  ;;  %672 = vmatpush2.msra.mxu1 %v414_v49  ;;  %v114_v48 = vld [vmem:[#allocation5 + $0x250] sm:$0xff]  ;;  %v115_v49 = vld [vmem:[#allocation5 + $0x258] sm:$0xff] }
  0x83   :  { %602 = vmatprep.subr.mxu0 %v405_v52  ;;  %673 = vmatprep.subr.mxu1 %v407_v53  ;;  %v324_v52 = vunpack.c.l.bf16 %v118_v42  ;;  %v326_v53 = vunpack.c.l.bf16 %v119_v43  ;;  %v317_v56 = vunpack.c.h.bf16 %v114_v48  ;;  %v319_v57 = vunpack.c.h.bf16 %v115_v49 }
  0x84   :  { %603 = vmatpush2.msra.mxu0 %v404_v54  ;;  %674 = vmatpush2.msra.mxu1 %v406_v55  ;;  %v110_v54 = vld [vmem:[#allocation5 + $0x230] sm:$0xff]  ;;  %v111_v55 = vld [vmem:[#allocation5 + $0x238] sm:$0xff] }
  0x85   :  { %604 = vmatprep.subr.mxu0 %v397_v58  ;;  %675 = vmatprep.subr.mxu1 %v399_v59  ;;  %v316_v58 = vunpack.c.l.bf16 %v114_v48  ;;  %v318_v59 = vunpack.c.l.bf16 %v115_v49  ;;  %v309_v62 = vunpack.c.h.bf16 %v110_v54  ;;  %v311_v63 = vunpack.c.h.bf16 %v111_v55 }
  0x86   :  { %605 = vmatpush2.msra.mxu0 %v396_v60  ;;  %676 = vmatpush2.msra.mxu1 %v398_v61  ;;  %v106_v60 = vld [vmem:[#allocation5 + $0x210] sm:$0xff]  ;;  %v107_v61 = vld [vmem:[#allocation5 + $0x218] sm:$0xff] }
  0x87   :  { %606 = vmatprep.subr.mxu0 %v389_v0  ;;  %677 = vmatprep.subr.mxu1 %v391_v2  ;;  %v308_v0 = vunpack.c.l.bf16 %v110_v54  ;;  %v310_v2 = vunpack.c.l.bf16 %v111_v55  ;;  %v300_v6 = vunpack.c.l.bf16 %v106_v60  ;;  %v302_v7 = vunpack.c.l.bf16 %v107_v61 }
  0x88   :  { %607 = vmatpush2.msra.mxu0 %v388_v3  ;;  %678 = vmatpush2.msra.mxu1 %v390_v4  ;;  %v301_v3 = vunpack.c.h.bf16 %v106_v60  ;;  %v303_v4 = vunpack.c.h.bf16 %v107_v61 }
  0x89   :  { %608 = vmatprep.subr.mxu0 %v381_v8  ;;  %679 = vmatprep.subr.mxu1 %v383_v9 }
  0x8a   :  { %609 = vmatpush2.msra.mxu0 %v380_v10  ;;  %680 = vmatpush2.msra.mxu1 %v382_v11 }
  0x8b   :  { %610 = vmatprep.subr.mxu0 %v373_v14  ;;  %681 = vmatprep.subr.mxu1 %v375_v15 }
  0x8c   :  { %611 = vmatpush2.msra.mxu0 %v372_v16  ;;  %682 = vmatpush2.msra.mxu1 %v374_v17 }
  0x8d   :  { %612 = vmatprep.subr.mxu0 %v365_v20  ;;  %683 = vmatprep.subr.mxu1 %v367_v21 }
  0x8e   :  { %613 = vmatpush2.msra.mxu0 %v364_v22  ;;  %684 = vmatpush2.msra.mxu1 %v366_v23 }
  0x8f   :  { %614 = vmatprep.subr.mxu0 %v357_v26  ;;  %685 = vmatprep.subr.mxu1 %v359_v27 }
  0x90   :  { %615 = vmatpush2.msra.mxu0 %v356_v28  ;;  %686 = vmatpush2.msra.mxu1 %v358_v29 }
  0x91   :  { %616 = vmatprep.subr.mxu0 %v349_v32  ;;  %687 = vmatprep.subr.mxu1 %v351_v33 }
  0x92   :  { %617 = vmatpush2.msra.mxu0 %v348_v34  ;;  %688 = vmatpush2.msra.mxu1 %v350_v35 }
  0x93   :  { %618 = vmatprep.subr.mxu0 %v341_v38  ;;  %689 = vmatprep.subr.mxu1 %v343_v39 }
  0x94   :  { %619 = vmatpush2.msra.mxu0 %v340_v40  ;;  %690 = vmatpush2.msra.mxu1 %v342_v41 }
  0x95   :  { %620 = vmatprep.subr.mxu0 %v333_v44  ;;  %691 = vmatprep.subr.mxu1 %v335_v45 }
  0x96   :  { %621 = vmatpush2.msra.mxu0 %v332_v46  ;;  %692 = vmatpush2.msra.mxu1 %v334_v47 }
  0x97   :  { %622 = vmatprep.subr.mxu0 %v325_v50  ;;  %693 = vmatprep.subr.mxu1 %v327_v51 }
  0x98   :  { %623 = vmatpush2.msra.mxu0 %v324_v52  ;;  %694 = vmatpush2.msra.mxu1 %v326_v53 }
  0x99   :  { %624 = vmatprep.subr.mxu0 %v317_v56  ;;  %695 = vmatprep.subr.mxu1 %v319_v57 }
  0x9a   :  { %625 = vmatpush2.msra.mxu0 %v316_v58  ;;  %696 = vmatpush2.msra.mxu1 %v318_v59 }
  0x9b   :  { %626 = vmatprep.subr.mxu0 %v309_v62  ;;  %697 = vmatprep.subr.mxu1 %v311_v63 }
  0x9c   :  { %627 = vmatpush2.msra.mxu0 %v308_v0  ;;  %698 = vmatpush2.msra.mxu1 %v310_v2 }
  0x9d   :  { %628 = vmatprep.subr.mxu0 %v301_v3  ;;  %699 = vmatprep.subr.mxu1 %v303_v4 }
  0x9e   :  { %629 = vmatpush2.msra.mxu0 %v300_v6  ;;  %630 = vmatprep.mubr.f32.mxu0 %v829_v1 }
  0x9f   :  { %700 = vmatpush2.msra.mxu1 %v302_v7  ;;  %701 = vmatprep.mubr.f32.mxu1 %v829_v1 }
  0xa0   :  { %631 = vmatmul.mubr.f32.vlgmr.msra.gmra.mxu0 %v831_v5  ;;  %702 = vmatmul.mubr.f32.vlgmr.msra.gmra.mxu1 %v831_v5 }
 0x11e   :  { %v490_v8 = vpop.f32.mrf.mxu0  ;;  %v561_v9 = vpop.f32.mrf.mxu1 }
 0x11f   :  { %708 = vst [vmem:[#allocation7] sm:$0xff] %v490_v8  ;;  %710 = vst [vmem:[#allocation7 + $0x10] sm:$0xff] %v561_v9 }
 0x120   :  { %v492_v10 = vpop.f32.mrf.mxu0  ;;  %v563_v11 = vpop.f32.mrf.mxu1 }
 0x121   :  { %709 = vst [vmem:[#allocation7 + $0x8] sm:$0xff] %v492_v10  ;;  %711 = vst [vmem:[#allocation7 + $0x18] sm:$0xff] %v563_v11 }
 0x160   :  { %v632_v12 = vpop.f32.mrf.mxu0  ;;  %v703_v13 = vpop.f32.mrf.mxu1 }
 0x161   :  { %712 = vst [vmem:[#allocation7 + $0x20] sm:$0xff] %v632_v12  ;;  %714 = vst [vmem:[#allocation7 + $0x30] sm:$0xff] %v703_v13 }
 0x162   :  { %v634_v1 = vpop.f32.mrf.mxu0  ;;  %v705_v14 = vpop.f32.mrf.mxu1 }
 0x163   :  { %713 = vst [vmem:[#allocation7 + $0x28] sm:$0xff] %v634_v1  ;;  %715 = vst [vmem:[#allocation7 + $0x38] sm:$0xff] %v705_v14 }
 0x164   :  { %788 = shalt.err (!%p785_p0)
}
 0x165   :  { %725 = dma.vmem_to_hbm [thread:$0]  %s723_s1, 1024, %s846_s2, [#allocation4]  }
 0x166   :  { %801 = dma.done.wait [#allocation4], 1024  }
 0x167   :  { %802 = vsyncadd [#allocation4], 4294966272 }
 0x168   :  { %729 = vsyncpa [#allocation3], 1 }
 0x169   :  { %730 = vsyncpa [#allocation6], 1 }
 0x16a   :  { %731 = vsyncpa [#allocation4], 1 }

// kernel: tpu_custom_call.1
= control target key start
LH: loop header
LB: loop body
LE: loop exit
PB: predicated region body
PF: predicated region fallthrough
CT: control target
= control target key end

     0   :  { %7 = vsyncpa [#allocation3], 0  ;;  %s844_s0 = inlined_call_operand.hbm [shape: f32[8,256], index: 0, kind: input, shape index: {}]   ;;  %s845_s1 = inlined_call_operand.hbm [shape: bf16[256,1024], index: 1, kind: input, shape index: {}]   ;;  %s846_s2 = inlined_call_operand.hbm [shape: f32[8,1024], index: 2, kind: output, shape index: {}]  }
   0x1   :  { %8 = vsyncpa [#allocation6], 0 }
   0x2   :  { %9 = vsyncpa [#allocation4], 0  ;;  %s803_s9 = smov [#allocation2]   ;;  %s804_s11 = smov [#allocation5]  }
   0x3   :  { %s16_s10 = sshll.u32 %s803_s9, 4  ;;  %s25_s12 = sshll.u32 %s804_s11, 4  ;;  %s17_s10 = int_to_ptr.vmem [resolvable:$true] %s16_s10  ;;  %s26_s12 = int_to_ptr.vmem [resolvable:$true] %s25_s12 }
   0x4   :  { %s745_s13 = scalar_lea.vmem %s17_s10, 256  ;;  %p750_p1 = scmp.lt.s32.totalorder %s17_s10, %s17_s10 }
   0x5   :  { %p746_p0 = scmp.ne.s32.totalorder %s17_s10, %s745_s13  ;;  %p751_p2 = scmp.lt.s32.totalorder %s745_s13, %s745_s13 }
   0x7   :  { %p752_p3 = por %p751_p2, %p750_p1 }
   0x9   :  { %p753_p4 = pnand %p752_p3, %p746_p0 }
   0xb   :  { %756 = shalt.err (!%p753_p4)
}
   0xc   :  { %19 = dma.hbm_to_vmem [thread:$0]  %s844_s0, 256, %s17_s10, [#allocation3]  }
   0xd   :  { %s765_s16 = scalar_lea.vmem %s26_s12, 16384  ;;  %p770_p6 = scmp.lt.s32.totalorder %s26_s12, %s26_s12 }
   0xe   :  { %p766_p5 = scmp.ne.s32.totalorder %s26_s12, %s765_s16  ;;  %p771_p7 = scmp.lt.s32.totalorder %s765_s16, %s765_s16 }
  0x10   :  { %p772_p8 = por %p771_p7, %p770_p6 }
  0x12   :  { %p773_p9 = pnand %p772_p8, %p766_p5 }
  0x14   :  { %776 = shalt.err (!%p773_p9)
}
  0x15   :  { %s805_s17 = smov 512   ;;  %s806_s18 = smov 32  }
  0x16   :  { %31 = dma.hbm_to_vmem [thread:$0]  %s845_s1, 16384, %s26_s12, [#allocation6], %s805_s17, %s805_s17, %s806_s18  }
  0x17   :  { %797 = dma.done.wait [#allocation3], 256  }
  0x18   :  { %798 = vsyncadd [#allocation3], 4294967040 }
  0x19   :  { %799 = dma.done.wait [#allocation6], 16384  }
  0x1a   :  { %800 = vsyncadd [#allocation6], 4294950912  ;;  %v100_v0 = vld [vmem:[#allocation5 + $0x1e0] sm:$0xff]  ;;  %v101_v1 = vld [vmem:[#allocation5 + $0x1e8] sm:$0xff]  ;;  %s807_s0 = smov [#allocation7]  }
  0x1b   :  { %v96_v2 = vld [vmem:[#allocation5 + $0x1c0] sm:$0xff]  ;;  %v289_v3 = vunpack.c.h.bf16 %v100_v0  ;;  %v291_v4 = vunpack.c.h.bf16 %v101_v1  ;;  %v288_v5 = vunpack.c.l.bf16 %v100_v0  ;;  %v290_v6 = vunpack.c.l.bf16 %v101_v1  ;;  %v97_v7 = vld [vmem:[#allocation5 + $0x1c8] sm:$0xff]  ;;  %s722_s1 = sshll.u32 %s807_s0, 4  ;;  %s723_s1 = int_to_ptr.vmem [resolvable:$true] %s722_s1 }
  0x1c   :  { %v92_v8 = vld [vmem:[#allocation5 + $0x1a0] sm:$0xff]  ;;  %v93_v9 = vld [vmem:[#allocation5 + $0x1a8] sm:$0xff]  ;;  %v281_v10 = vunpack.c.h.bf16 %v96_v2  ;;  %v283_v11 = vunpack.c.h.bf16 %v97_v7  ;;  %v280_v12 = vunpack.c.l.bf16 %v96_v2  ;;  %v282_v13 = vunpack.c.l.bf16 %v97_v7  ;;  %s777_s21 = scalar_lea.vmem %s723_s1, 1024  ;;  %p782_p11 = scmp.lt.s32.totalorder %s723_s1, %s723_s1 }
  0x1d   :  { %v88_v14 = vld [vmem:[#allocation5 + $0x180] sm:$0xff]  ;;  %v89_v15 = vld [vmem:[#allocation5 + $0x188] sm:$0xff]  ;;  %424 = vmatprep.subr.mxu0 %v289_v3  ;;  %495 = vmatprep.subr.mxu1 %v291_v4  ;;  %v273_v16 = vunpack.c.h.bf16 %v92_v8  ;;  %v275_v17 = vunpack.c.h.bf16 %v93_v9  ;;  %v272_v18 = vunpack.c.l.bf16 %v92_v8  ;;  %v274_v19 = vunpack.c.l.bf16 %v93_v9  ;;  %p778_p10 = scmp.ne.s32.totalorder %s723_s1, %s777_s21  ;;  %p783_p12 = scmp.lt.s32.totalorder %s777_s21, %s777_s21 }
  0x1e   :  { %425 = vmatpush1.msra.mxu0 %v288_v5  ;;  %496 = vmatpush1.msra.mxu1 %v290_v6  ;;  %v84_v20 = vld [vmem:[#allocation5 + $0x160] sm:$0xff]  ;;  %v85_v21 = vld [vmem:[#allocation5 + $0x168] sm:$0xff]  ;;  %v265_v22 = vunpack.c.h.bf16 %v88_v14  ;;  %v267_v23 = vunpack.c.h.bf16 %v89_v15  ;;  %v264_v24 = vunpack.c.l.bf16 %v88_v14  ;;  %v266_v25 = vunpack.c.l.bf16 %v89_v15 }
  0x1f   :  { %426 = vmatprep.subr.mxu0 %v281_v10  ;;  %497 = vmatprep.subr.mxu1 %v283_v11  ;;  %v80_v26 = vld [vmem:[#allocation5 + $0x140] sm:$0xff]  ;;  %v81_v27 = vld [vmem:[#allocation5 + $0x148] sm:$0xff]  ;;  %v257_v28 = vunpack.c.h.bf16 %v84_v20  ;;  %v259_v29 = vunpack.c.h.bf16 %v85_v21  ;;  %v256_v30 = vunpack.c.l.bf16 %v84_v20  ;;  %v258_v31 = vunpack.c.l.bf16 %v85_v21  ;;  %p784_p13 = por %p783_p12, %p782_p11 }
  0x20   :  { %427 = vmatpush1.msra.mxu0 %v280_v12  ;;  %498 = vmatpush1.msra.mxu1 %v282_v13  ;;  %v76_v32 = vld [vmem:[#allocation5 + $0x120] sm:$0xff]  ;;  %v77_v33 = vld [vmem:[#allocation5 + $0x128] sm:$0xff]  ;;  %v249_v34 = vunpack.c.h.bf16 %v80_v26  ;;  %v251_v35 = vunpack.c.h.bf16 %v81_v27  ;;  %v248_v36 = vunpack.c.l.bf16 %v80_v26  ;;  %v250_v37 = vunpack.c.l.bf16 %v81_v27 }
  0x21   :  { %428 = vmatprep.subr.mxu0 %v273_v16  ;;  %499 = vmatprep.subr.mxu1 %v275_v17  ;;  %v72_v38 = vld [vmem:[#allocation5 + $0x100] sm:$0xff]  ;;  %v73_v39 = vld [vmem:[#allocation5 + $0x108] sm:$0xff]  ;;  %v241_v40 = vunpack.c.h.bf16 %v76_v32  ;;  %v243_v41 = vunpack.c.h.bf16 %v77_v33  ;;  %v240_v42 = vunpack.c.l.bf16 %v76_v32  ;;  %v242_v43 = vunpack.c.l.bf16 %v77_v33  ;;  %p785_p0 = pnand %p784_p13, %p778_p10 }
  0x22   :  { %429 = vmatpush1.msra.mxu0 %v272_v18  ;;  %500 = vmatpush1.msra.mxu1 %v274_v19  ;;  %v68_v44 = vld [vmem:[#allocation5 + $0xe0] sm:$0xff]  ;;  %v69_v45 = vld [vmem:[#allocation5 + $0xe8] sm:$0xff]  ;;  %v233_v46 = vunpack.c.h.bf16 %v72_v38  ;;  %v235_v47 = vunpack.c.h.bf16 %v73_v39  ;;  %v232_v48 = vunpack.c.l.bf16 %v72_v38  ;;  %v234_v49 = vunpack.c.l.bf16 %v73_v39 }
  0x23   :  { %430 = vmatprep.subr.mxu0 %v265_v22  ;;  %501 = vmatprep.subr.mxu1 %v267_v23  ;;  %v64_v50 = vld [vmem:[#allocation5 + $0xc0] sm:$0xff]  ;;  %v65_v51 = vld [vmem:[#allocation5 + $0xc8] sm:$0xff]  ;;  %v225_v52 = vunpack.c.h.bf16 %v68_v44  ;;  %v227_v53 = vunpack.c.h.bf16 %v69_v45  ;;  %v224_v54 = vunpack.c.l.bf16 %v68_v44  ;;  %v226_v55 = vunpack.c.l.bf16 %v69_v45 }
  0x24   :  { %431 = vmatpush1.msra.mxu0 %v264_v24  ;;  %502 = vmatpush1.msra.mxu1 %v266_v25  ;;  %v60_v56 = vld [vmem:[#allocation5 + $0xa0] sm:$0xff]  ;;  %v61_v57 = vld [vmem:[#allocation5 + $0xa8] sm:$0xff]  ;;  %v217_v58 = vunpack.c.h.bf16 %v64_v50  ;;  %v219_v59 = vunpack.c.h.bf16 %v65_v51  ;;  %v216_v60 = vunpack.c.l.bf16 %v64_v50  ;;  %v218_v61 = vunpack.c.l.bf16 %v65_v51 }
  0x25   :  { %432 = vmatprep.subr.mxu0 %v257_v28  ;;  %503 = vmatprep.subr.mxu1 %v259_v29  ;;  %v56_v62 = vld [vmem:[#allocation5 + $0x80] sm:$0xff]  ;;  %v57_v63 = vld [vmem:[#allocation5 + $0x88] sm:$0xff]  ;;  %v209_v0 = vunpack.c.h.bf16 %v60_v56  ;;  %v211_v1 = vunpack.c.h.bf16 %v61_v57  ;;  %v208_v2 = vunpack.c.l.bf16 %v60_v56  ;;  %v210_v3 = vunpack.c.l.bf16 %v61_v57 }
  0x26   :  { %433 = vmatpush1.msra.mxu0 %v256_v30  ;;  %504 = vmatpush1.msra.mxu1 %v258_v31  ;;  %v52_v4 = vld [vmem:[#allocation5 + $0x60] sm:$0xff]  ;;  %v53_v5 = vld [vmem:[#allocation5 + $0x68] sm:$0xff]  ;;  %v201_v6 = vunpack.c.h.bf16 %v56_v62  ;;  %v203_v7 = vunpack.c.h.bf16 %v57_v63  ;;  %v200_v8 = vunpack.c.l.bf16 %v56_v62  ;;  %v202_v9 = vunpack.c.l.bf16 %v57_v63 }
  0x27   :  { %434 = vmatprep.subr.mxu0 %v249_v34  ;;  %505 = vmatprep.subr.mxu1 %v251_v35  ;;  %v48_v10 = vld [vmem:[#allocation5 + $0x40] sm:$0xff]  ;;  %v49_v11 = vld [vmem:[#allocation5 + $0x48] sm:$0xff]  ;;  %v193_v12 = vunpack.c.h.bf16 %v52_v4  ;;  %v195_v13 = vunpack.c.h.bf16 %v53_v5  ;;  %v192_v14 = vunpack.c.l.bf16 %v52_v4  ;;  %v194_v15 = vunpack.c.l.bf16 %v53_v5 }
  0x28   :  { %435 = vmatpush1.msra.mxu0 %v248_v36  ;;  %506 = vmatpush1.msra.mxu1 %v250_v37  ;;  %v44_v16 = vld [vmem:[#allocation5 + $0x20] sm:$0xff]  ;;  %v45_v17 = vld [vmem:[#allocation5 + $0x28] sm:$0xff]  ;;  %v185_v18 = vunpack.c.h.bf16 %v48_v10  ;;  %v187_v19 = vunpack.c.h.bf16 %v49_v11  ;;  %v184_v20 = vunpack.c.l.bf16 %v48_v10  ;;  %v186_v21 = vunpack.c.l.bf16 %v49_v11 }
  0x29   :  { %436 = vmatprep.subr.mxu0 %v241_v40  ;;  %507 = vmatprep.subr.mxu1 %v243_v41  ;;  %v40_v22 = vld [vmem:[#allocation5] sm:$0xff]  ;;  %v41_v23 = vld [vmem:[#allocation5 + $0x8] sm:$0xff]  ;;  %v177_v24 = vunpack.c.h.bf16 %v44_v16  ;;  %v179_v25 = vunpack.c.h.bf16 %v45_v17  ;;  %v176_v26 = vunpack.c.l.bf16 %v44_v16  ;;  %v178_v27 = vunpack.c.l.bf16 %v45_v17 }
  0x2a   :  { %437 = vmatpush1.msra.mxu0 %v240_v42  ;;  %508 = vmatpush1.msra.mxu1 %v242_v43  ;;  %v164_v28 = vld [vmem:[#allocation5 + $0x3e0] sm:$0xff]  ;;  %v165_v29 = vld [vmem:[#allocation5 + $0x3e8] sm:$0xff]  ;;  %v169_v30 = vunpack.c.h.bf16 %v40_v22  ;;  %v171_v31 = vunpack.c.h.bf16 %v41_v23  ;;  %v168_v32 = vunpack.c.l.bf16 %v40_v22  ;;  %v170_v33 = vunpack.c.l.bf16 %v41_v23 }
  0x2b   :  { %438 = vmatprep.subr.mxu0 %v233_v46  ;;  %509 = vmatprep.subr.mxu1 %v235_v47  ;;  %v160_v34 = vld [vmem:[#allocation5 + $0x3c0] sm:$0xff]  ;;  %v161_v35 = vld [vmem:[#allocation5 + $0x3c8] sm:$0xff]  ;;  %v417_v36 = vunpack.c.h.bf16 %v164_v28  ;;  %v419_v37 = vunpack.c.h.bf16 %v165_v29  ;;  %v416_v38 = vunpack.c.l.bf16 %v164_v28  ;;  %v418_v39 = vunpack.c.l.bf16 %v165_v29 }
  0x2c   :  { %439 = vmatpush1.msra.mxu0 %v232_v48  ;;  %510 = vmatpush1.msra.mxu1 %v234_v49  ;;  %v156_v40 = vld [vmem:[#allocation5 + $0x3a0] sm:$0xff]  ;;  %v157_v41 = vld [vmem:[#allocation5 + $0x3a8] sm:$0xff]  ;;  %v409_v42 = vunpack.c.h.bf16 %v160_v34  ;;  %v411_v43 = vunpack.c.h.bf16 %v161_v35  ;;  %v408_v44 = vunpack.c.l.bf16 %v160_v34  ;;  %v410_v45 = vunpack.c.l.bf16 %v161_v35 }
  0x2d   :  { %440 = vmatprep.subr.mxu0 %v225_v52  ;;  %511 = vmatprep.subr.mxu1 %v227_v53  ;;  %v152_v46 = vld [vmem:[#allocation5 + $0x380] sm:$0xff]  ;;  %v153_v47 = vld [vmem:[#allocation5 + $0x388] sm:$0xff]  ;;  %v401_v48 = vunpack.c.h.bf16 %v156_v40  ;;  %v403_v49 = vunpack.c.h.bf16 %v157_v41  ;;  %v400_v50 = vunpack.c.l.bf16 %v156_v40  ;;  %v402_v51 = vunpack.c.l.bf16 %v157_v41 }
  0x2e   :  { %441 = vmatpush1.msra.mxu0 %v224_v54  ;;  %512 = vmatpush1.msra.mxu1 %v226_v55  ;;  %v148_v52 = vld [vmem:[#allocation5 + $0x360] sm:$0xff]  ;;  %v149_v53 = vld [vmem:[#allocation5 + $0x368] sm:$0xff]  ;;  %v393_v54 = vunpack.c.h.bf16 %v152_v46  ;;  %v395_v55 = vunpack.c.h.bf16 %v153_v47  ;;  %v392_v56 = vunpack.c.l.bf16 %v152_v46  ;;  %v394_v57 = vunpack.c.l.bf16 %v153_v47 }
  0x2f   :  { %442 = vmatprep.subr.mxu0 %v217_v58  ;;  %513 = vmatprep.subr.mxu1 %v219_v59  ;;  %v144_v58 = vld [vmem:[#allocation5 + $0x340] sm:$0xff]  ;;  %v145_v59 = vld [vmem:[#allocation5 + $0x348] sm:$0xff]  ;;  %v384_v62 = vunpack.c.l.bf16 %v148_v52  ;;  %v386_v63 = vunpack.c.l.bf16 %v149_v53 }
  0x30   :  { %443 = vmatpush1.msra.mxu0 %v216_v60  ;;  %514 = vmatpush1.msra.mxu1 %v218_v61  ;;  %v385_v60 = vunpack.c.h.bf16 %v148_v52  ;;  %v387_v61 = vunpack.c.h.bf16 %v149_v53  ;;  %v376_v4 = vunpack.c.l.bf16 %v144_v58  ;;  %v378_v5 = vunpack.c.l.bf16 %v145_v59 }
  0x31   :  { %444 = vmatprep.subr.mxu0 %v209_v0  ;;  %515 = vmatprep.subr.mxu1 %v211_v1  ;;  %v140_v0 = vld [vmem:[#allocation5 + $0x320] sm:$0xff]  ;;  %v141_v1 = vld [vmem:[#allocation5 + $0x328] sm:$0xff] }
  0x32   :  { %445 = vmatpush1.msra.mxu0 %v208_v2  ;;  %516 = vmatpush1.msra.mxu1 %v210_v3  ;;  %v377_v2 = vunpack.c.h.bf16 %v144_v58  ;;  %v379_v3 = vunpack.c.h.bf16 %v145_v59  ;;  %v368_v10 = vunpack.c.l.bf16 %v140_v0  ;;  %v370_v11 = vunpack.c.l.bf16 %v141_v1 }
  0x33   :  { %446 = vmatprep.subr.mxu0 %v201_v6  ;;  %517 = vmatprep.subr.mxu1 %v203_v7  ;;  %v136_v6 = vld [vmem:[#allocation5 + $0x300] sm:$0xff]  ;;  %v137_v7 = vld [vmem:[#allocation5 + $0x308] sm:$0xff] }
  0x34   :  { %447 = vmatpush1.msra.mxu0 %v200_v8  ;;  %518 = vmatpush1.msra.mxu1 %v202_v9  ;;  %v369_v8 = vunpack.c.h.bf16 %v140_v0  ;;  %v371_v9 = vunpack.c.h.bf16 %v141_v1  ;;  %v360_v16 = vunpack.c.l.bf16 %v136_v6  ;;  %v362_v17 = vunpack.c.l.bf16 %v137_v7  ;;  %v103_v0 = vld [vmem:[#allocation5 + $0x1f8] sm:$0xff] }
  0x35   :  { %448 = vmatprep.subr.mxu0 %v193_v12  ;;  %519 = vmatprep.subr.mxu1 %v195_v13  ;;  %v132_v12 = vld [vmem:[#allocation5 + $0x2e0] sm:$0xff]  ;;  %v133_v13 = vld [vmem:[#allocation5 + $0x2e8] sm:$0xff]  ;;  %v829_v1 = vld [vmem:[#allocation2 + $0x8] sm:$0xff] }
  0x36   :  { %449 = vmatpush1.msra.mxu0 %v192_v14  ;;  %520 = vmatpush1.msra.mxu1 %v194_v15  ;;  %v361_v14 = vunpack.c.h.bf16 %v136_v6  ;;  %v363_v15 = vunpack.c.h.bf16 %v137_v7  ;;  %v352_v22 = vunpack.c.l.bf16 %v132_v12  ;;  %v354_v23 = vunpack.c.l.bf16 %v133_v13 }
  0x37   :  { %450 = vmatprep.subr.mxu0 %v185_v18  ;;  %521 = vmatprep.subr.mxu1 %v187_v19  ;;  %v128_v18 = vld [vmem:[#allocation5 + $0x2c0] sm:$0xff]  ;;  %v129_v19 = vld [vmem:[#allocation5 + $0x2c8] sm:$0xff]  ;;  %v295_v7 = vunpack.c.h.bf16 %v103_v0 }
  0x38   :  { %451 = vmatpush1.msra.mxu0 %v184_v20  ;;  %522 = vmatpush1.msra.mxu1 %v186_v21  ;;  %v353_v20 = vunpack.c.h.bf16 %v132_v12  ;;  %v355_v21 = vunpack.c.h.bf16 %v133_v13  ;;  %v344_v28 = vunpack.c.l.bf16 %v128_v18  ;;  %v346_v29 = vunpack.c.l.bf16 %v129_v19 }
  0x39   :  { %452 = vmatprep.subr.mxu0 %v177_v24  ;;  %523 = vmatprep.subr.mxu1 %v179_v25  ;;  %v124_v24 = vld [vmem:[#allocation5 + $0x2a0] sm:$0xff]  ;;  %v125_v25 = vld [vmem:[#allocation5 + $0x2a8] sm:$0xff] }
  0x3a   :  { %453 = vmatpush1.msra.mxu0 %v176_v26  ;;  %524 = vmatpush1.msra.mxu1 %v178_v27  ;;  %v345_v26 = vunpack.c.h.bf16 %v128_v18  ;;  %v347_v27 = vunpack.c.h.bf16 %v129_v19  ;;  %v336_v34 = vunpack.c.l.bf16 %v124_v24  ;;  %v338_v35 = vunpack.c.l.bf16 %v125_v25 }
  0x3b   :  { %454 = vmatprep.subr.mxu0 %v169_v30  ;;  %525 = vmatprep.subr.mxu1 %v171_v31  ;;  %v120_v30 = vld [vmem:[#allocation5 + $0x280] sm:$0xff]  ;;  %v121_v31 = vld [vmem:[#allocation5 + $0x288] sm:$0xff] }
  0x3c   :  { %455 = vmatpush1.msra.mxu0 %v168_v32  ;;  %526 = vmatpush1.msra.mxu1 %v170_v33  ;;  %v337_v32 = vunpack.c.h.bf16 %v124_v24  ;;  %v339_v33 = vunpack.c.h.bf16 %v125_v25  ;;  %v328_v40 = vunpack.c.l.bf16 %v120_v30  ;;  %v330_v41 = vunpack.c.l.bf16 %v121_v31 }
  0x3d   :  { %456 = vmatprep.subr.mxu0 %v417_v36  ;;  %527 = vmatprep.subr.mxu1 %v419_v37  ;;  %v116_v36 = vld [vmem:[#allocation5 + $0x260] sm:$0xff]  ;;  %v117_v37 = vld [vmem:[#allocation5 + $0x268] sm:$0xff] }
  0x3e   :  { %457 = vmatpush2.msra.mxu0 %v416_v38  ;;  %528 = vmatpush2.msra.mxu1 %v418_v39  ;;  %v329_v38 = vunpack.c.h.bf16 %v120_v30  ;;  %v331_v39 = vunpack.c.h.bf16 %v121_v31  ;;  %v320_v46 = vunpack.c.l.bf16 %v116_v36  ;;  %v322_v47 = vunpack.c.l.bf16 %v117_v37 }
  0x3f   :  { %458 = vmatprep.subr.mxu0 %v409_v42  ;;  %529 = vmatprep.subr.mxu1 %v411_v43  ;;  %v112_v42 = vld [vmem:[#allocation5 + $0x240] sm:$0xff]  ;;  %v113_v43 = vld [vmem:[#allocation5 + $0x248] sm:$0xff] }
  0x40   :  { %459 = vmatpush2.msra.mxu0 %v408_v44  ;;  %530 = vmatpush2.msra.mxu1 %v410_v45  ;;  %v321_v44 = vunpack.c.h.bf16 %v116_v36  ;;  %v323_v45 = vunpack.c.h.bf16 %v117_v37  ;;  %v312_v52 = vunpack.c.l.bf16 %v112_v42  ;;  %v314_v53 = vunpack.c.l.bf16 %v113_v43 }
  0x41   :  { %460 = vmatprep.subr.mxu0 %v401_v48  ;;  %531 = vmatprep.subr.mxu1 %v403_v49  ;;  %v108_v48 = vld [vmem:[#allocation5 + $0x220] sm:$0xff]  ;;  %v109_v49 = vld [vmem:[#allocation5 + $0x228] sm:$0xff] }
  0x42   :  { %461 = vmatpush2.msra.mxu0 %v400_v50  ;;  %532 = vmatpush2.msra.mxu1 %v402_v51  ;;  %v313_v50 = vunpack.c.h.bf16 %v112_v42  ;;  %v315_v51 = vunpack.c.h.bf16 %v113_v43  ;;  %v304_v58 = vunpack.c.l.bf16 %v108_v48  ;;  %v306_v59 = vunpack.c.l.bf16 %v109_v49 }
  0x43   :  { %462 = vmatprep.subr.mxu0 %v393_v54  ;;  %533 = vmatprep.subr.mxu1 %v395_v55  ;;  %v104_v54 = vld [vmem:[#allocation5 + $0x200] sm:$0xff]  ;;  %v105_v55 = vld [vmem:[#allocation5 + $0x208] sm:$0xff] }
  0x44   :  { %463 = vmatpush2.msra.mxu0 %v392_v56  ;;  %534 = vmatpush2.msra.mxu1 %v394_v57  ;;  %v305_v56 = vunpack.c.h.bf16 %v108_v48  ;;  %v307_v57 = vunpack.c.h.bf16 %v109_v49 }
  0x45   :  { %464 = vmatprep.subr.mxu0 %v385_v60  ;;  %535 = vmatprep.subr.mxu1 %v387_v61  ;;  %v297_v60 = vunpack.c.h.bf16 %v104_v54  ;;  %v299_v61 = vunpack.c.h.bf16 %v105_v55 }
  0x46   :  { %465 = vmatpush2.msra.mxu0 %v384_v62  ;;  %536 = vmatpush2.msra.mxu1 %v386_v63  ;;  %v296_v62 = vunpack.c.l.bf16 %v104_v54  ;;  %v102_v63 = vld [vmem:[#allocation5 + $0x1f0] sm:$0xff] }
  0x47   :  { %466 = vmatprep.subr.mxu0 %v377_v2  ;;  %537 = vmatprep.subr.mxu1 %v379_v3  ;;  %v298_v2 = vunpack.c.l.bf16 %v105_v55  ;;  %v98_v3 = vld [vmem:[#allocation5 + $0x1d0] sm:$0xff]  ;;  %v293_v6 = vunpack.c.h.bf16 %v102_v63 }
  0x48   :  { %467 = vmatpush2.msra.mxu0 %v376_v4  ;;  %538 = vmatpush2.msra.mxu1 %v378_v5  ;;  %v99_v4 = vld [vmem:[#allocation5 + $0x1d8] sm:$0xff]  ;;  %v831_v5 = vld [vmem:[#allocation2] sm:$0xff]  ;;  %v285_v12 = vunpack.c.h.bf16 %v98_v3 }
  0x49   :  { %468 = vmatprep.subr.mxu0 %v369_v8  ;;  %539 = vmatprep.subr.mxu1 %v371_v9  ;;  %v292_v8 = vunpack.c.l.bf16 %v102_v63  ;;  %v294_v9 = vunpack.c.l.bf16 %v103_v0  ;;  %v287_v13 = vunpack.c.h.bf16 %v99_v4  ;;  %v58_v0 = vld [vmem:[#allocation5 + $0x90] sm:$0xff] }
  0x4a   :  { %469 = vmatpush2.msra.mxu0 %v368_v10  ;;  %540 = vmatpush2.msra.mxu1 %v370_v11  ;;  %v94_v10 = vld [vmem:[#allocation5 + $0x1b0] sm:$0xff]  ;;  %v95_v11 = vld [vmem:[#allocation5 + $0x1b8] sm:$0xff] }
  0x4b   :  { %470 = vmatprep.subr.mxu0 %v361_v14  ;;  %541 = vmatprep.subr.mxu1 %v363_v15  ;;  %v284_v14 = vunpack.c.l.bf16 %v98_v3  ;;  %v286_v15 = vunpack.c.l.bf16 %v99_v4  ;;  %v277_v18 = vunpack.c.h.bf16 %v94_v10  ;;  %v279_v19 = vunpack.c.h.bf16 %v95_v11 }
  0x4c   :  { %471 = vmatpush2.msra.mxu0 %v360_v16  ;;  %542 = vmatpush2.msra.mxu1 %v362_v17  ;;  %v90_v16 = vld [vmem:[#allocation5 + $0x190] sm:$0xff]  ;;  %v91_v17 = vld [vmem:[#allocation5 + $0x198] sm:$0xff] }
  0x4d   :  { %472 = vmatprep.subr.mxu0 %v353_v20  ;;  %543 = vmatprep.subr.mxu1 %v355_v21  ;;  %v276_v20 = vunpack.c.l.bf16 %v94_v10  ;;  %v278_v21 = vunpack.c.l.bf16 %v95_v11  ;;  %v269_v24 = vunpack.c.h.bf16 %v90_v16  ;;  %v271_v25 = vunpack.c.h.bf16 %v91_v17 }
  0x4e   :  { %473 = vmatpush2.msra.mxu0 %v352_v22  ;;  %544 = vmatpush2.msra.mxu1 %v354_v23  ;;  %v86_v22 = vld [vmem:[#allocation5 + $0x170] sm:$0xff]  ;;  %v87_v23 = vld [vmem:[#allocation5 + $0x178] sm:$0xff]  ;;  %v205_v10 = vunpack.c.h.bf16 %v58_v0 }
  0x4f   :  { %474 = vmatprep.subr.mxu0 %v345_v26  ;;  %545 = vmatprep.subr.mxu1 %v347_v27  ;;  %v268_v26 = vunpack.c.l.bf16 %v90_v16  ;;  %v270_v27 = vunpack.c.l.bf16 %v91_v17  ;;  %v261_v30 = vunpack.c.h.bf16 %v86_v22  ;;  %v263_v31 = vunpack.c.h.bf16 %v87_v23 }
  0x50   :  { %475 = vmatpush2.msra.mxu0 %v344_v28  ;;  %546 = vmatpush2.msra.mxu1 %v346_v29  ;;  %v82_v28 = vld [vmem:[#allocation5 + $0x150] sm:$0xff]  ;;  %v83_v29 = vld [vmem:[#allocation5 + $0x158] sm:$0xff] }
  0x51   :  { %476 = vmatprep.subr.mxu0 %v337_v32  ;;  %547 = vmatprep.subr.mxu1 %v339_v33  ;;  %v260_v32 = vunpack.c.l.bf16 %v86_v22  ;;  %v262_v33 = vunpack.c.l.bf16 %v87_v23  ;;  %v253_v36 = vunpack.c.h.bf16 %v82_v28  ;;  %v255_v37 = vunpack.c.h.bf16 %v83_v29 }
  0x52   :  { %477 = vmatpush2.msra.mxu0 %v336_v34  ;;  %548 = vmatpush2.msra.mxu1 %v338_v35  ;;  %v78_v34 = vld [vmem:[#allocation5 + $0x130] sm:$0xff]  ;;  %v79_v35 = vld [vmem:[#allocation5 + $0x138] sm:$0xff] }
  0x53   :  { %478 = vmatprep.subr.mxu0 %v329_v38  ;;  %549 = vmatprep.subr.mxu1 %v331_v39  ;;  %v252_v38 = vunpack.c.l.bf16 %v82_v28  ;;  %v254_v39 = vunpack.c.l.bf16 %v83_v29  ;;  %v245_v42 = vunpack.c.h.bf16 %v78_v34  ;;  %v247_v43 = vunpack.c.h.bf16 %v79_v35 }
  0x54   :  { %479 = vmatpush2.msra.mxu0 %v328_v40  ;;  %550 = vmatpush2.msra.mxu1 %v330_v41  ;;  %v74_v40 = vld [vmem:[#allocation5 + $0x110] sm:$0xff]  ;;  %v75_v41 = vld [vmem:[#allocation5 + $0x118] sm:$0xff] }
  0x55   :  { %480 = vmatprep.subr.mxu0 %v321_v44  ;;  %551 = vmatprep.subr.mxu1 %v323_v45  ;;  %v244_v44 = vunpack.c.l.bf16 %v78_v34  ;;  %v246_v45 = vunpack.c.l.bf16 %v79_v35  ;;  %v237_v48 = vunpack.c.h.bf16 %v74_v40  ;;  %v239_v49 = vunpack.c.h.bf16 %v75_v41 }
  0x56   :  { %481 = vmatpush2.msra.mxu0 %v320_v46  ;;  %552 = vmatpush2.msra.mxu1 %v322_v47  ;;  %v70_v46 = vld [vmem:[#allocation5 + $0xf0] sm:$0xff]  ;;  %v71_v47 = vld [vmem:[#allocation5 + $0xf8] sm:$0xff] }
  0x57   :  { %482 = vmatprep.subr.mxu0 %v313_v50  ;;  %553 = vmatprep.subr.mxu1 %v315_v51  ;;  %v236_v50 = vunpack.c.l.bf16 %v74_v40  ;;  %v238_v51 = vunpack.c.l.bf16 %v75_v41  ;;  %v229_v54 = vunpack.c.h.bf16 %v70_v46  ;;  %v231_v55 = vunpack.c.h.bf16 %v71_v47 }
  0x58   :  { %483 = vmatpush2.msra.mxu0 %v312_v52  ;;  %554 = vmatpush2.msra.mxu1 %v314_v53  ;;  %v66_v52 = vld [vmem:[#allocation5 + $0xd0] sm:$0xff]  ;;  %v67_v53 = vld [vmem:[#allocation5 + $0xd8] sm:$0xff] }
  0x59   :  { %484 = vmatprep.subr.mxu0 %v305_v56  ;;  %555 = vmatprep.subr.mxu1 %v307_v57  ;;  %v228_v56 = vunpack.c.l.bf16 %v70_v46  ;;  %v230_v57 = vunpack.c.l.bf16 %v71_v47  ;;  %v222_v63 = vunpack.c.l.bf16 %v67_v53 }
  0x5a   :  { %485 = vmatpush2.msra.mxu0 %v304_v58  ;;  %556 = vmatpush2.msra.mxu1 %v306_v59  ;;  %v62_v58 = vld [vmem:[#allocation5 + $0xb0] sm:$0xff]  ;;  %v63_v59 = vld [vmem:[#allocation5 + $0xb8] sm:$0xff] }
  0x5b   :  { %486 = vmatprep.subr.mxu0 %v297_v60  ;;  %557 = vmatprep.subr.mxu1 %v299_v61  ;;  %v221_v60 = vunpack.c.h.bf16 %v66_v52  ;;  %v223_v61 = vunpack.c.h.bf16 %v67_v53  ;;  %v213_v3 = vunpack.c.h.bf16 %v62_v58  ;;  %v215_v4 = vunpack.c.h.bf16 %v63_v59 }
  0x5c   :  { %487 = vmatpush2.msra.mxu0 %v296_v62  ;;  %488 = vmatprep.mubr.f32.mxu0 %v829_v1  ;;  %v220_v62 = vunpack.c.l.bf16 %v66_v52 }
  0x5d   :  { %558 = vmatpush2.msra.mxu1 %v298_v2  ;;  %559 = vmatprep.mubr.f32.mxu1 %v829_v1  ;;  %v59_v2 = vld [vmem:[#allocation5 + $0x98] sm:$0xff] }
  0x5e   :  { %489 = vmatmul.mubr.f32.vlgmr.msra.gmra.mxu0 %v831_v5  ;;  %560 = vmatmul.mubr.f32.vlgmr.msra.gmra.mxu1 %v831_v5  ;;  %v207_v11 = vunpack.c.h.bf16 %v59_v2 }
  0x5f   :  { %566 = vmatprep.subr.mxu0 %v293_v6  ;;  %637 = vmatprep.subr.mxu1 %v295_v7  ;;  %v212_v6 = vunpack.c.l.bf16 %v62_v58  ;;  %v214_v7 = vunpack.c.l.bf16 %v63_v59 }
  0x60   :  { %567 = vmatpush1.msra.mxu0 %v292_v8  ;;  %638 = vmatpush1.msra.mxu1 %v294_v9  ;;  %v54_v8 = vld [vmem:[#allocation5 + $0x70] sm:$0xff]  ;;  %v55_v9 = vld [vmem:[#allocation5 + $0x78] sm:$0xff] }
  0x61   :  { %568 = vmatprep.subr.mxu0 %v285_v12  ;;  %639 = vmatprep.subr.mxu1 %v287_v13  ;;  %v204_v12 = vunpack.c.l.bf16 %v58_v0  ;;  %v206_v13 = vunpack.c.l.bf16 %v59_v2  ;;  %v197_v16 = vunpack.c.h.bf16 %v54_v8  ;;  %v199_v17 = vunpack.c.h.bf16 %v55_v9 }
  0x62   :  { %569 = vmatpush1.msra.mxu0 %v284_v14  ;;  %640 = vmatpush1.msra.mxu1 %v286_v15  ;;  %v50_v14 = vld [vmem:[#allocation5 + $0x50] sm:$0xff]  ;;  %v51_v15 = vld [vmem:[#allocation5 + $0x58] sm:$0xff] }
  0x63   :  { %570 = vmatprep.subr.mxu0 %v277_v18  ;;  %641 = vmatprep.subr.mxu1 %v279_v19  ;;  %v196_v18 = vunpack.c.l.bf16 %v54_v8  ;;  %v198_v19 = vunpack.c.l.bf16 %v55_v9  ;;  %v189_v22 = vunpack.c.h.bf16 %v50_v14  ;;  %v191_v23 = vunpack.c.h.bf16 %v51_v15 }
  0x64   :  { %571 = vmatpush1.msra.mxu0 %v276_v20  ;;  %642 = vmatpush1.msra.mxu1 %v278_v21  ;;  %v46_v20 = vld [vmem:[#allocation5 + $0x30] sm:$0xff]  ;;  %v47_v21 = vld [vmem:[#allocation5 + $0x38] sm:$0xff] }
  0x65   :  { %572 = vmatprep.subr.mxu0 %v269_v24  ;;  %643 = vmatprep.subr.mxu1 %v271_v25  ;;  %v188_v24 = vunpack.c.l.bf16 %v50_v14  ;;  %v190_v25 = vunpack.c.l.bf16 %v51_v15  ;;  %v181_v28 = vunpack.c.h.bf16 %v46_v20  ;;  %v183_v29 = vunpack.c.h.bf16 %v47_v21 }
  0x66   :  { %573 = vmatpush1.msra.mxu0 %v268_v26  ;;  %644 = vmatpush1.msra.mxu1 %v270_v27  ;;  %v42_v26 = vld [vmem:[#allocation5 + $0x10] sm:$0xff]  ;;  %v43_v27 = vld [vmem:[#allocation5 + $0x18] sm:$0xff] }
  0x67   :  { %574 = vmatprep.subr.mxu0 %v261_v30  ;;  %645 = vmatprep.subr.mxu1 %v263_v31  ;;  %v180_v30 = vunpack.c.l.bf16 %v46_v20  ;;  %v182_v31 = vunpack.c.l.bf16 %v47_v21  ;;  %v173_v34 = vunpack.c.h.bf16 %v42_v26  ;;  %v175_v35 = vunpack.c.h.bf16 %v43_v27 }
  0x68   :  { %575 = vmatpush1.msra.mxu0 %v260_v32  ;;  %646 = vmatpush1.msra.mxu1 %v262_v33  ;;  %v166_v32 = vld [vmem:[#allocation5 + $0x3f0] sm:$0xff]  ;;  %v167_v33 = vld [vmem:[#allocation5 + $0x3f8] sm:$0xff] }
  0x69   :  { %576 = vmatprep.subr.mxu0 %v253_v36  ;;  %647 = vmatprep.subr.mxu1 %v255_v37  ;;  %v172_v36 = vunpack.c.l.bf16 %v42_v26  ;;  %v174_v37 = vunpack.c.l.bf16 %v43_v27  ;;  %v421_v40 = vunpack.c.h.bf16 %v166_v32  ;;  %v423_v41 = vunpack.c.h.bf16 %v167_v33 }
  0x6a   :  { %577 = vmatpush1.msra.mxu0 %v252_v38  ;;  %648 = vmatpush1.msra.mxu1 %v254_v39  ;;  %v162_v38 = vld [vmem:[#allocation5 + $0x3d0] sm:$0xff]  ;;  %v163_v39 = vld [vmem:[#allocation5 + $0x3d8] sm:$0xff] }
  0x6b   :  { %578 = vmatprep.subr.mxu0 %v245_v42  ;;  %649 = vmatprep.subr.mxu1 %v247_v43  ;;  %v420_v42 = vunpack.c.l.bf16 %v166_v32  ;;  %v422_v43 = vunpack.c.l.bf16 %v167_v33  ;;  %v413_v46 = vunpack.c.h.bf16 %v162_v38  ;;  %v415_v47 = vunpack.c.h.bf16 %v163_v39 }
  0x6c   :  { %579 = vmatpush1.msra.mxu0 %v244_v44  ;;  %650 = vmatpush1.msra.mxu1 %v246_v45  ;;  %v158_v44 = vld [vmem:[#allocation5 + $0x3b0] sm:$0xff]  ;;  %v159_v45 = vld [vmem:[#allocation5 + $0x3b8] sm:$0xff] }
  0x6d   :  { %580 = vmatprep.subr.mxu0 %v237_v48  ;;  %651 = vmatprep.subr.mxu1 %v239_v49  ;;  %v412_v48 = vunpack.c.l.bf16 %v162_v38  ;;  %v414_v49 = vunpack.c.l.bf16 %v163_v39  ;;  %v405_v52 = vunpack.c.h.bf16 %v158_v44  ;;  %v407_v53 = vunpack.c.h.bf16 %v159_v45 }
  0x6e   :  { %581 = vmatpush1.msra.mxu0 %v236_v50  ;;  %652 = vmatpush1.msra.mxu1 %v238_v51  ;;  %v154_v50 = vld [vmem:[#allocation5 + $0x390] sm:$0xff]  ;;  %v155_v51 = vld [vmem:[#allocation5 + $0x398] sm:$0xff] }
  0x6f   :  { %582 = vmatprep.subr.mxu0 %v229_v54  ;;  %653 = vmatprep.subr.mxu1 %v231_v55  ;;  %v404_v54 = vunpack.c.l.bf16 %v158_v44  ;;  %v406_v55 = vunpack.c.l.bf16 %v159_v45  ;;  %v397_v58 = vunpack.c.h.bf16 %v154_v50  ;;  %v399_v59 = vunpack.c.h.bf16 %v155_v51 }
  0x70   :  { %583 = vmatpush1.msra.mxu0 %v228_v56  ;;  %654 = vmatpush1.msra.mxu1 %v230_v57  ;;  %v150_v56 = vld [vmem:[#allocation5 + $0x370] sm:$0xff]  ;;  %v151_v57 = vld [vmem:[#allocation5 + $0x378] sm:$0xff] }
  0x71   :  { %584 = vmatprep.subr.mxu0 %v221_v60  ;;  %655 = vmatprep.subr.mxu1 %v223_v61  ;;  %v396_v60 = vunpack.c.l.bf16 %v154_v50  ;;  %v398_v61 = vunpack.c.l.bf16 %v155_v51  ;;  %v389_v0 = vunpack.c.h.bf16 %v150_v56  ;;  %v391_v2 = vunpack.c.h.bf16 %v151_v57 }
  0x72   :  { %585 = vmatpush1.msra.mxu0 %v220_v62  ;;  %656 = vmatpush1.msra.mxu1 %v222_v63  ;;  %v146_v62 = vld [vmem:[#allocation5 + $0x350] sm:$0xff]  ;;  %v147_v63 = vld [vmem:[#allocation5 + $0x358] sm:$0xff] }
  0x73   :  { %586 = vmatprep.subr.mxu0 %v213_v3  ;;  %657 = vmatprep.subr.mxu1 %v215_v4  ;;  %v388_v3 = vunpack.c.l.bf16 %v150_v56  ;;  %v390_v4 = vunpack.c.l.bf16 %v151_v57  ;;  %v381_v8 = vunpack.c.h.bf16 %v146_v62  ;;  %v383_v9 = vunpack.c.h.bf16 %v147_v63 }
  0x74   :  { %587 = vmatpush1.msra.mxu0 %v212_v6  ;;  %658 = vmatpush1.msra.mxu1 %v214_v7  ;;  %v142_v6 = vld [vmem:[#allocation5 + $0x330] sm:$0xff]  ;;  %v143_v7 = vld [vmem:[#allocation5 + $0x338] sm:$0xff] }
  0x75   :  { %588 = vmatprep.subr.mxu0 %v205_v10  ;;  %659 = vmatprep.subr.mxu1 %v207_v11  ;;  %v380_v10 = vunpack.c.l.bf16 %v146_v62  ;;  %v382_v11 = vunpack.c.l.bf16 %v147_v63  ;;  %v373_v14 = vunpack.c.h.bf16 %v142_v6  ;;  %v375_v15 = vunpack.c.h.bf16 %v143_v7 }
  0x76   :  { %589 = vmatpush1.msra.mxu0 %v204_v12  ;;  %660 = vmatpush1.msra.mxu1 %v206_v13  ;;  %v138_v12 = vld [vmem:[#allocation5 + $0x310] sm:$0xff]  ;;  %v139_v13 = vld [vmem:[#allocation5 + $0x318] sm:$0xff] }
  0x77   :  { %590 = vmatprep.subr.mxu0 %v197_v16  ;;  %661 = vmatprep.subr.mxu1 %v199_v17  ;;  %v372_v16 = vunpack.c.l.bf16 %v142_v6  ;;  %v374_v17 = vunpack.c.l.bf16 %v143_v7  ;;  %v365_v20 = vunpack.c.h.bf16 %v138_v12  ;;  %v367_v21 = vunpack.c.h.bf16 %v139_v13 }
  0x78   :  { %591 = vmatpush1.msra.mxu0 %v196_v18  ;;  %662 = vmatpush1.msra.mxu1 %v198_v19  ;;  %v134_v18 = vld [vmem:[#allocation5 + $0x2f0] sm:$0xff]  ;;  %v135_v19 = vld [vmem:[#allocation5 + $0x2f8] sm:$0xff] }
  0x79   :  { %592 = vmatprep.subr.mxu0 %v189_v22  ;;  %663 = vmatprep.subr.mxu1 %v191_v23  ;;  %v364_v22 = vunpack.c.l.bf16 %v138_v12  ;;  %v366_v23 = vunpack.c.l.bf16 %v139_v13  ;;  %v357_v26 = vunpack.c.h.bf16 %v134_v18  ;;  %v359_v27 = vunpack.c.h.bf16 %v135_v19 }
  0x7a   :  { %593 = vmatpush1.msra.mxu0 %v188_v24  ;;  %664 = vmatpush1.msra.mxu1 %v190_v25  ;;  %v130_v24 = vld [vmem:[#allocation5 + $0x2d0] sm:$0xff]  ;;  %v131_v25 = vld [vmem:[#allocation5 + $0x2d8] sm:$0xff] }
  0x7b   :  { %594 = vmatprep.subr.mxu0 %v181_v28  ;;  %665 = vmatprep.subr.mxu1 %v183_v29  ;;  %v356_v28 = vunpack.c.l.bf16 %v134_v18  ;;  %v358_v29 = vunpack.c.l.bf16 %v135_v19  ;;  %v349_v32 = vunpack.c.h.bf16 %v130_v24  ;;  %v351_v33 = vunpack.c.h.bf16 %v131_v25 }
  0x7c   :  { %595 = vmatpush1.msra.mxu0 %v180_v30  ;;  %666 = vmatpush1.msra.mxu1 %v182_v31  ;;  %v126_v30 = vld [vmem:[#allocation5 + $0x2b0] sm:$0xff]  ;;  %v127_v31 = vld [vmem:[#allocation5 + $0x2b8] sm:$0xff] }
  0x7d   :  { %596 = vmatprep.subr.mxu0 %v173_v34  ;;  %667 = vmatprep.subr.mxu1 %v175_v35  ;;  %v348_v34 = vunpack.c.l.bf16 %v130_v24  ;;  %v350_v35 = vunpack.c.l.bf16 %v131_v25  ;;  %v341_v38 = vunpack.c.h.bf16 %v126_v30  ;;  %v343_v39 = vunpack.c.h.bf16 %v127_v31 }
  0x7e   :  { %597 = vmatpush1.msra.mxu0 %v172_v36  ;;  %668 = vmatpush1.msra.mxu1 %v174_v37  ;;  %v122_v36 = vld [vmem:[#allocation5 + $0x290] sm:$0xff]  ;;  %v123_v37 = vld [vmem:[#allocation5 + $0x298] sm:$0xff] }
  0x7f   :  { %598 = vmatprep.subr.mxu0 %v421_v40  ;;  %669 = vmatprep.subr.mxu1 %v423_v41  ;;  %v340_v40 = vunpack.c.l.bf16 %v126_v30  ;;  %v342_v41 = vunpack.c.l.bf16 %v127_v31  ;;  %v333_v44 = vunpack.c.h.bf16 %v122_v36  ;;  %v335_v45 = vunpack.c.h.bf16 %v123_v37 }
  0x80   :  { %599 = vmatpush2.msra.mxu0 %v420_v42  ;;  %670 = vmatpush2.msra.mxu1 %v422_v43  ;;  %v118_v42 = vld [vmem:[#allocation5 + $0x270] sm:$0xff]  ;;  %v119_v43 = vld [vmem:[#allocation5 + $0x278] sm:$0xff] }
  0x81   :  { %600 = vmatprep.subr.mxu0 %v413_v46  ;;  %671 = vmatprep.subr.mxu1 %v415_v47  ;;  %v332_v46 = vunpack.c.l.bf16 %v122_v36  ;;  %v334_v47 = vunpack.c.l.bf16 %v123_v37  ;;  %v325_v50 = vunpack.c.h.bf16 %v118_v42  ;;  %v327_v51 = vunpack.c.h.bf16 %v119_v43 }
  0x82   :  { %601 = vmatpush2.msra.mxu0 %v412_v48  ;;  %672 = vmatpush2.msra.mxu1 %v414_v49  ;;  %v114_v48 = vld [vmem:[#allocation5 + $0x250] sm:$0xff]  ;;  %v115_v49 = vld [vmem:[#allocation5 + $0x258] sm:$0xff] }
  0x83   :  { %602 = vmatprep.subr.mxu0 %v405_v52  ;;  %673 = vmatprep.subr.mxu1 %v407_v53  ;;  %v324_v52 = vunpack.c.l.bf16 %v118_v42  ;;  %v326_v53 = vunpack.c.l.bf16 %v119_v43  ;;  %v317_v56 = vunpack.c.h.bf16 %v114_v48  ;;  %v319_v57 = vunpack.c.h.bf16 %v115_v49 }
  0x84   :  { %603 = vmatpush2.msra.mxu0 %v404_v54  ;;  %674 = vmatpush2.msra.mxu1 %v406_v55  ;;  %v110_v54 = vld [vmem:[#allocation5 + $0x230] sm:$0xff]  ;;  %v111_v55 = vld [vmem:[#allocation5 + $0x238] sm:$0xff] }
  0x85   :  { %604 = vmatprep.subr.mxu0 %v397_v58  ;;  %675 = vmatprep.subr.mxu1 %v399_v59  ;;  %v316_v58 = vunpack.c.l.bf16 %v114_v48  ;;  %v318_v59 = vunpack.c.l.bf16 %v115_v49  ;;  %v309_v62 = vunpack.c.h.bf16 %v110_v54  ;;  %v311_v63 = vunpack.c.h.bf16 %v111_v55 }
  0x86   :  { %605 = vmatpush2.msra.mxu0 %v396_v60  ;;  %676 = vmatpush2.msra.mxu1 %v398_v61  ;;  %v106_v60 = vld [vmem:[#allocation5 + $0x210] sm:$0xff]  ;;  %v107_v61 = vld [vmem:[#allocation5 + $0x218] sm:$0xff] }
  0x87   :  { %606 = vmatprep.subr.mxu0 %v389_v0  ;;  %677 = vmatprep.subr.mxu1 %v391_v2  ;;  %v308_v0 = vunpack.c.l.bf16 %v110_v54  ;;  %v310_v2 = vunpack.c.l.bf16 %v111_v55  ;;  %v300_v6 = vunpack.c.l.bf16 %v106_v60  ;;  %v302_v7 = vunpack.c.l.bf16 %v107_v61 }
  0x88   :  { %607 = vmatpush2.msra.mxu0 %v388_v3  ;;  %678 = vmatpush2.msra.mxu1 %v390_v4  ;;  %v301_v3 = vunpack.c.h.bf16 %v106_v60  ;;  %v303_v4 = vunpack.c.h.bf16 %v107_v61 }
  0x89   :  { %608 = vmatprep.subr.mxu0 %v381_v8  ;;  %679 = vmatprep.subr.mxu1 %v383_v9 }
  0x8a   :  { %609 = vmatpush2.msra.mxu0 %v380_v10  ;;  %680 = vmatpush2.msra.mxu1 %v382_v11 }
  0x8b   :  { %610 = vmatprep.subr.mxu0 %v373_v14  ;;  %681 = vmatprep.subr.mxu1 %v375_v15 }
  0x8c   :  { %611 = vmatpush2.msra.mxu0 %v372_v16  ;;  %682 = vmatpush2.msra.mxu1 %v374_v17 }
  0x8d   :  { %612 = vmatprep.subr.mxu0 %v365_v20  ;;  %683 = vmatprep.subr.mxu1 %v367_v21 }
  0x8e   :  { %613 = vmatpush2.msra.mxu0 %v364_v22  ;;  %684 = vmatpush2.msra.mxu1 %v366_v23 }
  0x8f   :  { %614 = vmatprep.subr.mxu0 %v357_v26  ;;  %685 = vmatprep.subr.mxu1 %v359_v27 }
  0x90   :  { %615 = vmatpush2.msra.mxu0 %v356_v28  ;;  %686 = vmatpush2.msra.mxu1 %v358_v29 }
  0x91   :  { %616 = vmatprep.subr.mxu0 %v349_v32  ;;  %687 = vmatprep.subr.mxu1 %v351_v33 }
  0x92   :  { %617 = vmatpush2.msra.mxu0 %v348_v34  ;;  %688 = vmatpush2.msra.mxu1 %v350_v35 }
  0x93   :  { %618 = vmatprep.subr.mxu0 %v341_v38  ;;  %689 = vmatprep.subr.mxu1 %v343_v39 }
  0x94   :  { %619 = vmatpush2.msra.mxu0 %v340_v40  ;;  %690 = vmatpush2.msra.mxu1 %v342_v41 }
  0x95   :  { %620 = vmatprep.subr.mxu0 %v333_v44  ;;  %691 = vmatprep.subr.mxu1 %v335_v45 }
  0x96   :  { %621 = vmatpush2.msra.mxu0 %v332_v46  ;;  %692 = vmatpush2.msra.mxu1 %v334_v47 }
  0x97   :  { %622 = vmatprep.subr.mxu0 %v325_v50  ;;  %693 = vmatprep.subr.mxu1 %v327_v51 }
  0x98   :  { %623 = vmatpush2.msra.mxu0 %v324_v52  ;;  %694 = vmatpush2.msra.mxu1 %v326_v53 }
  0x99   :  { %624 = vmatprep.subr.mxu0 %v317_v56  ;;  %695 = vmatprep.subr.mxu1 %v319_v57 }
  0x9a   :  { %625 = vmatpush2.msra.mxu0 %v316_v58  ;;  %696 = vmatpush2.msra.mxu1 %v318_v59 }
  0x9b   :  { %626 = vmatprep.subr.mxu0 %v309_v62  ;;  %697 = vmatprep.subr.mxu1 %v311_v63 }
  0x9c   :  { %627 = vmatpush2.msra.mxu0 %v308_v0  ;;  %698 = vmatpush2.msra.mxu1 %v310_v2 }
  0x9d   :  { %628 = vmatprep.subr.mxu0 %v301_v3  ;;  %699 = vmatprep.subr.mxu1 %v303_v4 }
  0x9e   :  { %629 = vmatpush2.msra.mxu0 %v300_v6  ;;  %630 = vmatprep.mubr.f32.mxu0 %v829_v1 }
  0x9f   :  { %700 = vmatpush2.msra.mxu1 %v302_v7  ;;  %701 = vmatprep.mubr.f32.mxu1 %v829_v1 }
  0xa0   :  { %631 = vmatmul.mubr.f32.vlgmr.msra.gmra.mxu0 %v831_v5  ;;  %702 = vmatmul.mubr.f32.vlgmr.msra.gmra.mxu1 %v831_v5 }
 0x11e   :  { %v490_v8 = vpop.f32.mrf.mxu0  ;;  %v561_v9 = vpop.f32.mrf.mxu1 }
 0x11f   :  { %708 = vst [vmem:[#allocation7] sm:$0xff] %v490_v8  ;;  %710 = vst [vmem:[#allocation7 + $0x10] sm:$0xff] %v561_v9 }
 0x120   :  { %v492_v10 = vpop.f32.mrf.mxu0  ;;  %v563_v11 = vpop.f32.mrf.mxu1 }
 0x121   :  { %709 = vst [vmem:[#allocation7 + $0x8] sm:$0xff] %v492_v10  ;;  %711 = vst [vmem:[#allocation7 + $0x18] sm:$0xff] %v563_v11 }
 0x160   :  { %v632_v12 = vpop.f32.mrf.mxu0  ;;  %v703_v13 = vpop.f32.mrf.mxu1 }
 0x161   :  { %712 = vst [vmem:[#allocation7 + $0x20] sm:$0xff] %v632_v12  ;;  %714 = vst [vmem:[#allocation7 + $0x30] sm:$0xff] %v703_v13 }
 0x162   :  { %v634_v1 = vpop.f32.mrf.mxu0  ;;  %v705_v14 = vpop.f32.mrf.mxu1 }
 0x163   :  { %713 = vst [vmem:[#allocation7 + $0x28] sm:$0xff] %v634_v1  ;;  %715 = vst [vmem:[#allocation7 + $0x38] sm:$0xff] %v705_v14 }
 0x164   :  { %788 = shalt.err (!%p785_p0)
}
 0x165   :  { %725 = dma.vmem_to_hbm [thread:$0]  %s723_s1, 1024, %s846_s2, [#allocation4]  }
 0x166   :  { %801 = dma.done.wait [#allocation4], 1024  }
 0x167   :  { %802 = vsyncadd [#allocation4], 4294966272 }
 0x168   :  { %729 = vsyncpa [#allocation3], 1 }
 0x169   :  { %730 = vsyncpa [#allocation6], 1 }
 0x16a   :  { %731 = vsyncpa [#allocation4], 1 }

</bundles_post_ra>
